<compile_context>
chip_gen: v7x
topology: tpu7x:2x2x1
jax: 0.10.0
libtpu: 0.0.40
codegen_flags: <defaults>
</compile_context>

<pallas_src>
import functools
import numpy as np
import jax
import jax.numpy as jnp
from jax.experimental import pallas as pl
from jax.experimental.pallas import tpu as pltpu

LANE = 128
NEG = -3.0e38          # "-inf" stand-in that stays finite in bf16


def _round_up(v, m):
    return ((v + m - 1) // m) * m


def _cpad(n):
    return _round_up(n, LANE)


def _pick(dim, cands):
    for c in cands:
        if dim % c == 0:
            return c
    return dim


# ---------------------------- Pallas kernels ----------------------------

def _conv_kernel(x_ref, w_ref, s_ref, t_ref, o_ref, acc_ref, *, offs, L, relu):
    """Direct conv over a flattened padded image.

    x_ref: (L+E, Cin_p) bf16, w_ref: (taps, Cin_p, tco) bf16,
    s_ref/t_ref: (1, tco) f32, o_ref: (L, tco), acc_ref: (L, tco) f32 scratch.
    """
    for i, off in enumerate(offs):
        part = jnp.dot(x_ref[off:off + L, :], w_ref[i],
                       preferred_element_type=jnp.float32)
        if i == 0:
            acc_ref[...] = part
        else:
            acc_ref[...] += part
    r = acc_ref[...] * s_ref[...] + t_ref[...]
    if relu:
        r = jnp.maximum(r, 0.0)
    o_ref[...] = r.astype(o_ref.dtype)


def _matmul_fused_kernel(x_ref, w_ref, s_ref, t_ref, o_ref, acc_ref, *, relu):
    k = pl.program_id(2)

    @pl.when(k == 0)
    def _():
        acc_ref[...] = jnp.zeros_like(acc_ref)

    acc_ref[...] += jnp.dot(x_ref[...], w_ref[...],
                            preferred_element_type=jnp.float32)

    @pl.when(k == pl.num_programs(2) - 1)
    def _():
        r = acc_ref[...] * s_ref[...] + t_ref[...]
        if relu:
            r = jnp.maximum(r, 0.0)
        o_ref[...] = r.astype(o_ref.dtype)


def _maxpool_kernel(x_ref, o_ref, *, cp):
    xv = x_ref[...]                       # (oh, 2, ow, 2*cp)
    r0 = xv[:, 0]
    r1 = xv[:, 1]
    o_ref[...] = jnp.maximum(jnp.maximum(r0[..., :cp], r0[..., cp:]),
                             jnp.maximum(r1[..., :cp], r1[..., cp:]))


def _add_kernel(a_ref, b_ref, o_ref):
    o_ref[...] = a_ref[...] + b_ref[...]


def _avg_kernel(a_ref, b_ref, o_ref):
    o_ref[...] = (a_ref[...] + b_ref[...]) * 0.5


# ---------------------------- kernel wrappers ----------------------------

def conv2d(x, p, *, relu, pad):
    """x: (N,H,W,Cin_p) bf16 channel-padded; p['w']: (kh,kw,Cin_p,Cout_p) bf16."""
    w4 = p['w']
    kh, kw, cip, cop = w4.shape
    N, H, W, _ = x.shape
    Hp, Wp = H + 2 * pad, W + 2 * pad
    Ho, Wo = Hp - kh + 1, Wp - kw + 1
    L = Hp * Wp
    E = (kh - 1) * Wp + (kw - 1)

    xp = jnp.pad(x, ((0, 0), (pad, pad), (pad, pad), (0, 0)))
    xe = jnp.pad(xp.reshape(N, L, cip), ((0, 0), (0, E), (0, 0)))
    wf = w4.reshape(kh * kw, cip, cop)
    offs = tuple(di * Wp + dj for di in range(kh) for dj in range(kw))

    tco = _pick(cop, (256, 128))
    grid = (N, cop // tco)
    yf = pl.pallas_call(
        functools.partial(_conv_kernel, offs=offs, L=L, relu=relu),
        out_shape=jax.ShapeDtypeStruct((N, L, cop), x.dtype),
        grid_spec=pltpu.PrefetchScalarGridSpec(
            num_scalar_prefetch=0,
            grid=grid,
            in_specs=[
                pl.BlockSpec((None, L + E, cip), lambda n, j: (n, 0, 0)),
                pl.BlockSpec((kh * kw, cip, tco), lambda n, j: (0, 0, j)),
                pl.BlockSpec((1, tco), lambda n, j: (0, j)),
                pl.BlockSpec((1, tco), lambda n, j: (0, j)),
            ],
            out_specs=pl.BlockSpec((None, L, tco), lambda n, j: (n, 0, j)),
            scratch_shapes=[pltpu.VMEM((L, tco), jnp.float32)],
        ),
        compiler_params=pltpu.CompilerParams(
            dimension_semantics=("parallel", "parallel")),
    )(xe, wf, p['scale'], p['shift'])
    return yf.reshape(N, Hp, Wp, cop)[:, :Ho, :Wo, :]


def matmul_fused(x, w, scale, shift, relu):
    """out = maybe_relu((x @ w) * scale + shift); w pre-padded (Kp,Np) bf16."""
    M, K = x.shape
    Kp, Np = w.shape
    Mp = max(_round_up(M, 8), 8)
    xb = jnp.pad(x, ((0, Mp - M), (0, Kp - K))).astype(jnp.bfloat16)
    tm = min(Mp, 256)
    while Mp % tm:
        tm -= 8
    tk = _pick(Kp, (2048, 1024, 512, 256, 128))
    tn = _pick(Np, (512, 256, 128))
    grid = (Mp // tm, Np // tn, Kp // tk)
    return pl.pallas_call(
        functools.partial(_matmul_fused_kernel, relu=relu),
        out_shape=jax.ShapeDtypeStruct((Mp, Np), jnp.float32),
        grid_spec=pltpu.PrefetchScalarGridSpec(
            num_scalar_prefetch=0,
            grid=grid,
            in_specs=[
                pl.BlockSpec((tm, tk), lambda i, j, k: (i, k)),
                pl.BlockSpec((tk, tn), lambda i, j, k: (k, j)),
                pl.BlockSpec((1, tn), lambda i, j, k: (0, j)),
                pl.BlockSpec((1, tn), lambda i, j, k: (0, j)),
            ],
            out_specs=pl.BlockSpec((tm, tn), lambda i, j, k: (i, j)),
            scratch_shapes=[pltpu.VMEM((tm, tn), jnp.float32)],
        ),
        compiler_params=pltpu.CompilerParams(
            dimension_semantics=("parallel", "parallel", "arbitrary")),
    )(xb, w, scale, shift)


def maxpool2(x, pad=0):
    """MaxPool2d(kernel=2, stride=2, padding=pad), floor mode; x (N,H,W,Cp)."""
    N, H, W, Cp = x.shape
    if pad:
        x = jnp.pad(x, ((0, 0), (pad, pad), (pad, pad), (0, 0)),
                    constant_values=NEG)
        H, W = H + 2 * pad, W + 2 * pad
    oh, ow = (H - 2) // 2 + 1, (W - 2) // 2 + 1
    x = x[:, :2 * oh, :2 * ow, :]
    xr = x.reshape(N, oh, 2, ow, 2 * Cp)          # free view of the same bytes
    return pl.pallas_call(
        functools.partial(_maxpool_kernel, cp=Cp),
        out_shape=jax.ShapeDtypeStruct((N, oh, ow, Cp), x.dtype),
        grid_spec=pltpu.PrefetchScalarGridSpec(
            num_scalar_prefetch=0,
            grid=(N,),
            in_specs=[pl.BlockSpec((None, oh, 2, ow, 2 * Cp),
                                   lambda n: (n, 0, 0, 0, 0))],
            out_specs=pl.BlockSpec((None, oh, ow, Cp),
                                   lambda n: (n, 0, 0, 0)),
        ),
        compiler_params=pltpu.CompilerParams(
            dimension_semantics=("parallel",)),
    )(xr)


def _ew2(kernel, a, b):
    R, C = a.shape
    tm = R
    for cand in (1024, 512, 256, 128, 64, 32, 16, 8):
        if R % cand == 0:
            tm = cand
            break
    return pl.pallas_call(
        kernel,
        out_shape=jax.ShapeDtypeStruct(a.shape, a.dtype),
        grid_spec=pltpu.PrefetchScalarGridSpec(
            num_scalar_prefetch=0,
            grid=(R // tm,),
            in_specs=[pl.BlockSpec((tm, C), lambda i: (i, 0)),
                      pl.BlockSpec((tm, C), lambda i: (i, 0))],
            out_specs=pl.BlockSpec((tm, C), lambda i: (i, 0)),
        ),
        compiler_params=pltpu.CompilerParams(
            dimension_semantics=("parallel",)),
    )(a, b)


# ---------------------------- layer helpers ----------------------------

def conv_transpose2d_s2(x, p):
    """ConvTranspose2d(k=4, stride=2, padding=1) via zero-insertion + conv."""
    # TODO(synk): 4-phase sub-pixel decomposition would avoid the 75%-zero MACs.
    N, H, W, Cp = x.shape
    up = jnp.zeros((N, 2 * H - 1, 2 * W - 1, Cp), x.dtype)
    up = up.at[:, ::2, ::2, :].set(x)
    return conv2d(up, p, relu=False, pad=2)


def vgg_body(x, convs, last_pool_pad):
    # 13 conv-bn-relu layers; pools after conv indices 1, 3, 6, 9, 12
    for i, p in enumerate(convs):
        x = conv2d(x, p, relu=True, pad=1)
        if i in (1, 3, 6, 9):
            x = maxpool2(x, pad=0)
    return maxpool2(x, pad=last_pool_pad)


def mlp(x, ps):
    # TODO(synk): Dropout -> identity (inference semantics).
    h = matmul_fused(x, ps[0]['w'], ps[0]['scale'], ps[0]['shift'], relu=True)
    h = matmul_fused(h, ps[1]['w'], ps[1]['scale'], ps[1]['shift'], relu=True)
    return matmul_fused(h, ps[2]['w'], ps[2]['scale'], ps[2]['shift'], relu=False)


# ---------------------------- parameter init & prep ----------------------------

class KeyGen:
    def __init__(self, key):
        self.key = key

    def next(self):
        self.key, sub = jax.random.split(self.key)
        return sub


def init_conv(kg, cin, cout, k=3):
    w = jax.random.normal(kg.next(), (k, k, cin, cout), jnp.float32)
    w = w * (1.0 / np.sqrt(k * k * cin))
    b = 0.01 * jax.random.normal(kg.next(), (cout,), jnp.float32)
    return {'w': w, 'b': b}


def init_bn(kg, c):
    return {
        'gamma': 1.0 + 0.1 * jax.random.normal(kg.next(), (c,), jnp.float32),
        'beta': 0.1 * jax.random.normal(kg.next(), (c,), jnp.float32),
        'mean': 0.05 * jax.random.normal(kg.next(), (c,), jnp.float32),
        'var': 1.0 + 0.1 * jnp.abs(jax.random.normal(kg.next(), (c,), jnp.float32)),
    }


def init_lin(kg, cin, cout):
    w = jax.random.normal(kg.next(), (cin, cout), jnp.float32) / np.sqrt(cin)
    b = 0.01 * jax.random.normal(kg.next(), (cout,), jnp.float32)
    return {'w': w, 'b': b}


def vgg_cfg(ch):
    return [(3, ch), (ch, ch),
            (ch, 2 * ch), (2 * ch, 2 * ch),
            (2 * ch, 4 * ch), (4 * ch, 4 * ch), (4 * ch, 4 * ch),
            (4 * ch, 8 * ch), (8 * ch, 8 * ch), (8 * ch, 8 * ch),
            (8 * ch, 8 * ch), (8 * ch, 8 * ch), (8 * ch, 8 * ch)]


def init_params(key, ch1, ch2, lastsize):
    kg = KeyGen(key)
    params = {}
    params['layer1_1'] = [init_conv(kg, 3, 16), init_conv(kg, 16, 16),
                          init_conv(kg, 16, 16), init_conv(kg, 16, 3)]
    params['layer1_2'] = [init_conv(kg, 3, 16), init_conv(kg, 16, 16),
                          init_conv(kg, 16, 16), init_conv(kg, 16, 3)]
    params['layer2_1'] = [init_conv(kg, 3, 16, k=4), init_conv(kg, 16, 16),
                          init_conv(kg, 16, 16), init_conv(kg, 16, 3)]
    params['convlayer1'] = [{'conv': init_conv(kg, ci, co), 'bn': init_bn(kg, co)}
                            for (ci, co) in vgg_cfg(ch1)]
    params['convlayer2'] = [{'conv': init_conv(kg, ci, co), 'bn': init_bn(kg, co)}
                            for (ci, co) in vgg_cfg(ch2)]
    lsH = 2 * lastsize - 1
    d1 = 8 * ch1 * lastsize * lastsize
    d2 = d1 + 8 * ch2 * lsH * lsH
    params['fc1'] = [init_lin(kg, d1, 4096), init_lin(kg, 4096, 4096),
                     init_lin(kg, 4096, 1000)]
    params['fc2'] = [init_lin(kg, d2, 4096), init_lin(kg, 4096, 4096),
                     init_lin(kg, 4096, 1000)]
    return params


def prep_conv(p, bn=None):
    """Pad channels to 128 lanes, fold BN into scale/shift, cast weight to bf16."""
    w = p['w']
    kh, kw, cin, cout = w.shape
    cip, cop = _cpad(cin), _cpad(cout)
    wp = jnp.pad(w, ((0, 0), (0, 0), (0, cip - cin), (0, cop - cout)))
    if bn is None:
        scale = jnp.ones((cout,), jnp.float32)
        shift = p['b']
    else:
        scale = bn['gamma'] / jnp.sqrt(bn['var'] + 1e-5)
        shift = bn['beta'] - bn['mean'] * scale + p['b'] * scale
    scale = jnp.pad(scale, (0, cop - cout)).reshape(1, cop).astype(jnp.float32)
    shift = jnp.pad(shift, (0, cop - cout)).reshape(1, cop).astype(jnp.float32)
    return {'w': wp.astype(jnp.bfloat16), 'scale': scale, 'shift': shift}


def prep_linear(p):
    w = p['w']
    K, N = w.shape
    Kp, Np = _cpad(K), _cpad(N)
    wp = jnp.pad(w, ((0, Kp - K), (0, Np - N))).astype(jnp.bfloat16)
    scale = jnp.pad(jnp.ones((N,), jnp.float32), (0, Np - N)).reshape(1, Np)
    shift = jnp.pad(p['b'], (0, Np - N)).reshape(1, Np).astype(jnp.float32)
    return {'w': wp, 'scale': scale, 'shift': shift}


def prepare_params(params):
    return {
        'layer1_1': [prep_conv(p) for p in params['layer1_1']],
        'layer1_2': [prep_conv(p) for p in params['layer1_2']],
        'layer2_1': [prep_conv(p) for p in params['layer2_1']],
        'convlayer1': [prep_conv(p['conv'], p['bn']) for p in params['convlayer1']],
        'convlayer2': [prep_conv(p['conv'], p['bn']) for p in params['convlayer2']],
        'fc1': [prep_linear(p) for p in params['fc1']],
        'fc2': [prep_linear(p) for p in params['fc2']],
    }


# ---------------------------- forward ----------------------------

def forward(x_nchw, prep, *, ch1, ch2):
    n = x_nchw.shape[0]
    x = jnp.transpose(x_nchw, (0, 2, 3, 1)).astype(jnp.float32)        # NHWC
    x = jnp.pad(x, ((0, 0), (0, 0), (0, 0), (0, LANE - x.shape[-1])))
    x = x.astype(jnp.bfloat16)                                         # (N,H,W,128)

    # layer1_1 (last conv has stride 2: stride-1 conv + subsample)
    c = x
    for i, p in enumerate(prep['layer1_1']):
        c = conv2d(c, p, relu=False, pad=1)
        if i == 3:
            c = c[:, ::2, ::2, :]

    # layer1_2
    d = x
    for p in prep['layer1_2']:
        d = conv2d(d, p, relu=False, pad=1)

    # layer2_1: ConvTranspose2d(4, s2, p1) then 3 convs
    cu = conv_transpose2d_s2(c, prep['layer2_1'][0])
    for p in prep['layer2_1'][1:]:
        cu = conv2d(cu, p, relu=False, pad=1)

    # residual: out = d + layer2_1(c)     (lane-dense elementwise kernel)
    R, Cl = d.shape[0] * d.shape[1] * d.shape[2], d.shape[3]
    out = _ew2(_add_kernel, d.reshape(R, Cl), cu.reshape(R, Cl)).reshape(d.shape)

    fL = vgg_body(c, prep['convlayer1'], last_pool_pad=1)
    fH = vgg_body(d, prep['convlayer2'], last_pool_pad=0)

    # PyTorch flattens NCHW as (N, C*H*W); drop the channel padding first.
    fLview = jnp.transpose(fL[..., :8 * ch1], (0, 3, 1, 2)).reshape(n, -1)
    fHview = jnp.transpose(fH[..., :8 * ch2], (0, 3, 1, 2)).reshape(n, -1)
    C = jnp.concatenate([fLview, fHview], axis=1)

    sL = mlp(fLview, prep['fc1'])[:n, :1000]
    sC = mlp(C, prep['fc2'])[:n, :1000]
    s = _ew2(_avg_kernel, sL, sC)

    to_nchw = lambda t: jnp.transpose(t[..., :3], (0, 3, 1, 2)).astype(jnp.float32)
    return sL, sC, s, to_nchw(c), to_nchw(d), to_nchw(out)


# ---------------------------- self-tests ----------------------------

def _self_test(prep):
    key = jax.random.PRNGKey(42)
    x = jax.random.normal(key, (1, 8, 8, 3), jnp.float32)
    xpd = jnp.pad(x, ((0, 0), (0, 0), (0, 0), (0, LANE - 3))).astype(jnp.bfloat16)

    # Direct conv kernel vs lax.conv on identical bf16-rounded inputs.
    p = prep['convlayer2'][0]
    got = conv2d(xpd, p, relu=True, pad=1).astype(jnp.float32)
    ref = jax.lax.conv_general_dilated(
        xpd.astype(jnp.float32), p['w'].astype(jnp.float32),
        window_strides=(1, 1), padding=((1, 1), (1, 1)),
        dimension_numbers=('NHWC', 'HWIO', 'NHWC'))
    ref = jnp.maximum(ref * p['scale'].reshape(1, 1, 1, -1)
                      + p['shift'].reshape(1, 1, 1, -1), 0.0)
    np.testing.assert_allclose(np.asarray(got), np.asarray(ref),
                               rtol=5e-2, atol=5e-2)

    # Fused maxpool vs reference.
    gotp = maxpool2(xpd, pad=0).astype(jnp.float32)
    refp = xpd.astype(jnp.float32).reshape(1, 4, 2, 4, 2, LANE).max(axis=(2, 4))
    np.testing.assert_allclose(np.asarray(gotp), np.asarray(refp),
                               rtol=1e-6, atol=1e-6)


# ---------------------------- main ----------------------------

if __name__ == "__main__":
    # Small, self-consistent configuration:
    #   ch1=8, ch2=4, lastsize=1  ->  input spatial 32 (c is 16x16, d is 32x32;
    #   5 pools bring both down to 1x1; lastsizeH = 2*lastsize-1 = 1).
    ch1, ch2, lastsize = 8, 4, 1
    key = jax.random.PRNGKey(0)
    k_x, k_p = jax.random.split(key)
    x = jax.random.normal(k_x, (2, 3, 32, 32), jnp.float32)   # NCHW like PyTorch
    params = init_params(k_p, ch1, ch2, lastsize)
    prep = prepare_params(params)                             # BN fold / pad / bf16 once

    _self_test(prep)

    fwd = jax.jit(functools.partial(forward, ch1=ch1, ch2=ch2))
    sL, sC, s, c, d, out = fwd(x, prep)
    for t in (sL, sC, s, c, d, out):
        jax.block_until_ready(t)

    assert sL.shape == (2, 1000) and sC.shape == (2, 1000) and s.shape == (2, 1000)
    assert c.shape == (2, 3, 16, 16) and d.shape == (2, 3, 32, 32)
    assert out.shape == (2, 3, 32, 32)
    assert bool(jnp.isfinite(s).all()) and bool(jnp.isfinite(out).all())
    print("KERNEL_OK")
</pallas_src>

<mosaic_0001>
module attributes {stable_mosaic.version = 11 : i64} {
  func.func @_conv_kernel(%arg0: i32, %arg1: i32, %arg2: memref<1x122x128xbf16, #tpu.memory_space<vmem>>, %arg3: memref<9x128x128xbf16, #tpu.memory_space<vmem>>, %arg4: memref<1x128xf32, #tpu.memory_space<vmem>>, %arg5: memref<1x128xf32, #tpu.memory_space<vmem>>, %arg6: memref<1x100x128xbf16, #tpu.memory_space<vmem>>, %arg7: memref<100x128xf32, #tpu.memory_space<vmem>>) attributes {dimension_semantics = [#tpu.dimension_semantics<parallel>, #tpu.dimension_semantics<parallel>], iteration_bounds = array<i64: 1, 1>, scalar_prefetch = 0 : i64, scratch_operands = 1 : i64, tpu.core_type = #tpu.core_type<tc>, window_params = [{transform_indices = @transform_0, window_bounds = array<i64: 1, 122, 128>}, {transform_indices = @transform_1, window_bounds = array<i64: 9, 128, 128>}, {transform_indices = @transform_2, window_bounds = array<i64: 1, 128>}, {transform_indices = @transform_3, window_bounds = array<i64: 1, 128>}, {transform_indices = @transform_4, window_bounds = array<i64: 1, 100, 128>}]} {
    %c0 = arith.constant 0 : index
    %c0_0 = arith.constant 0 : index
    %c0_1 = arith.constant 0 : index
    %0 = vector.load %arg2[%c0, %c0_0, %c0_1] : memref<1x122x128xbf16, #tpu.memory_space<vmem>>, vector<1x100x128xbf16>
    %1 = vector.shape_cast %0 : vector<1x100x128xbf16> to vector<100x128xbf16>
    %c0_2 = arith.constant 0 : index
    %c0_3 = arith.constant 0 : index
    %c0_4 = arith.constant 0 : index
    %2 = vector.load %arg3[%c0_2, %c0_3, %c0_4] : memref<9x128x128xbf16, #tpu.memory_space<vmem>>, vector<1x128x128xbf16>
    %3 = vector.shape_cast %2 : vector<1x128x128xbf16> to vector<128x128xbf16>
    %cst = arith.constant dense<0.000000e+00> : vector<100x128xf32>
    %4 = tpu.matmul %1, %3, %cst {dimension_numbers = #tpu.dot_dimension_numbers<[1], [0], [0], [1], [0, 0, 1, 1], [], []>} : vector<100x128xbf16>, vector<128x128xbf16>, vector<100x128xf32> -> vector<100x128xf32>
    %c0_5 = arith.constant 0 : index
    %c0_6 = arith.constant 0 : index
    %5 = vector.load %arg7[%c0_5, %c0_6] : memref<100x128xf32, #tpu.memory_space<vmem>>, vector<100x128xf32>
    tpu.vector_store %arg7[%c0_5, %c0_6], %4 {strides = array<i32>} : memref<100x128xf32, #tpu.memory_space<vmem>>, vector<100x128xf32>,
    %c0_7 = arith.constant 0 : index
    %c1 = arith.constant 1 : index
    %c0_8 = arith.constant 0 : index
    %6 = vector.load %arg2[%c0_7, %c1, %c0_8] : memref<1x122x128xbf16, #tpu.memory_space<vmem>>, vector<1x100x128xbf16>
    %7 = vector.shape_cast %6 : vector<1x100x128xbf16> to vector<100x128xbf16>
    %c1_9 = arith.constant 1 : index
    %c0_10 = arith.constant 0 : index
    %c0_11 = arith.constant 0 : index
    %8 = vector.load %arg3[%c1_9, %c0_10, %c0_11] : memref<9x128x128xbf16, #tpu.memory_space<vmem>>, vector<1x128x128xbf16>
    %9 = vector.shape_cast %8 : vector<1x128x128xbf16> to vector<128x128xbf16>
    %cst_12 = arith.constant dense<0.000000e+00> : vector<100x128xf32>
    %10 = tpu.matmul %7, %9, %cst_12 {dimension_numbers = #tpu.dot_dimension_numbers<[1], [0], [0], [1], [0, 0, 1, 1], [], []>} : vector<100x128xbf16>, vector<128x128xbf16>, vector<100x128xf32> -> vector<100x128xf32>
    %c0_13 = arith.constant 0 : index
    %c0_14 = arith.constant 0 : index
    %11 = vector.load %arg7[%c0_13, %c0_14] : memref<100x128xf32, #tpu.memory_space<vmem>>, vector<100x128xf32>
    %12 = arith.addf %11, %10 : vector<100x128xf32>
    %c0_15 = arith.constant 0 : index
    %c0_16 = arith.constant 0 : index
    %13 = vector.load %arg7[%c0_15, %c0_16] : memref<100x128xf32, #tpu.memory_space<vmem>>, vector<100x128xf32>
    tpu.vector_store %arg7[%c0_15, %c0_16], %12 {strides = array<i32>} : memref<100x128xf32, #tpu.memory_space<vmem>>, vector<100x128xf32>,
    %c0_17 = arith.constant 0 : index
    %c2 = arith.constant 2 : index
    %c0_18 = arith.constant 0 : index
    %14 = vector.load %arg2[%c0_17, %c2, %c0_18] : memref<1x122x128xbf16, #tpu.memory_space<vmem>>, vector<1x100x128xbf16>
    %15 = vector.shape_cast %14 : vector<1x100x128xbf16> to vector<100x128xbf16>
    %c2_19 = arith.constant 2 : index
    %c0_20 = arith.constant 0 : index
    %c0_21 = arith.constant 0 : index
    %16 = vector.load %arg3[%c2_19, %c0_20, %c0_21] : memref<9x128x128xbf16, #tpu.memory_space<vmem>>, vector<1x128x128xbf16>
    %17 = vector.shape_cast %16 : vector<1x128x128xbf16> to vector<128x128xbf16>
    %cst_22 = arith.constant dense<0.000000e+00> : vector<100x128xf32>
    %18 = tpu.matmul %15, %17, %cst_22 {dimension_numbers = #tpu.dot_dimension_numbers<[1], [0], [0], [1], [0, 0, 1, 1], [], []>} : vector<100x128xbf16>, vector<128x128xbf16>, vector<100x128xf32> -> vector<100x128xf32>
    %c0_23 = arith.constant 0 : index
    %c0_24 = arith.constant 0 : index
    %19 = vector.load %arg7[%c0_23, %c0_24] : memref<100x128xf32, #tpu.memory_space<vmem>>, vector<100x128xf32>
    %20 = arith.addf %19, %18 : vector<100x128xf32>
    %c0_25 = arith.constant 0 : index
    %c0_26 = arith.constant 0 : index
    %21 = vector.load %arg7[%c0_25, %c0_26] : memref<100x128xf32, #tpu.memory_space<vmem>>, vector<100x128xf32>
    tpu.vector_store %arg7[%c0_25, %c0_26], %20 {strides = array<i32>} : memref<100x128xf32, #tpu.memory_space<vmem>>, vector<100x128xf32>,
    %c0_27 = arith.constant 0 : index
    %c10 = arith.constant 10 : index
    %c0_28 = arith.constant 0 : index
    %22 = vector.load %arg2[%c0_27, %c10, %c0_28] : memref<1x122x128xbf16, #tpu.memory_space<vmem>>, vector<1x100x128xbf16>
    %23 = vector.shape_cast %22 : vector<1x100x128xbf16> to vector<100x128xbf16>
    %c3 = arith.constant 3 : index
    %c0_29 = arith.constant 0 : index
    %c0_30 = arith.constant 0 : index
    %24 = vector.load %arg3[%c3, %c0_29, %c0_30] : memref<9x128x128xbf16, #tpu.memory_space<vmem>>, vector<1x128x128xbf16>
    %25 = vector.shape_cast %24 : vector<1x128x128xbf16> to vector<128x128xbf16>
    %cst_31 = arith.constant dense<0.000000e+00> : vector<100x128xf32>
    %26 = tpu.matmul %23, %25, %cst_31 {dimension_numbers = #tpu.dot_dimension_numbers<[1], [0], [0], [1], [0, 0, 1, 1], [], []>} : vector<100x128xbf16>, vector<128x128xbf16>, vector<100x128xf32> -> vector<100x128xf32>
    %c0_32 = arith.constant 0 : index
    %c0_33 = arith.constant 0 : index
    %27 = vector.load %arg7[%c0_32, %c0_33] : memref<100x128xf32, #tpu.memory_space<vmem>>, vector<100x128xf32>
    %28 = arith.addf %27, %26 : vector<100x128xf32>
    %c0_34 = arith.constant 0 : index
    %c0_35 = arith.constant 0 : index
    %29 = vector.load %arg7[%c0_34, %c0_35] : memref<100x128xf32, #tpu.memory_space<vmem>>, vector<100x128xf32>
    tpu.vector_store %arg7[%c0_34, %c0_35], %28 {strides = array<i32>} : memref<100x128xf32, #tpu.memory_space<vmem>>, vector<100x128xf32>,
    %c0_36 = arith.constant 0 : index
    %c11 = arith.constant 11 : index
    %c0_37 = arith.constant 0 : index
    %30 = vector.load %arg2[%c0_36, %c11, %c0_37] : memref<1x122x128xbf16, #tpu.memory_space<vmem>>, vector<1x100x128xbf16>
    %31 = vector.shape_cast %30 : vector<1x100x128xbf16> to vector<100x128xbf16>
    %c4 = arith.constant 4 : index
    %c0_38 = arith.constant 0 : index
    %c0_39 = arith.constant 0 : index
    %32 = vector.load %arg3[%c4, %c0_38, %c0_39] : memref<9x128x128xbf16, #tpu.memory_space<vmem>>, vector<1x128x128xbf16>
    %33 = vector.shape_cast %32 : vector<1x128x128xbf16> to vector<128x128xbf16>
    %cst_40 = arith.constant dense<0.000000e+00> : vector<100x128xf32>
    %34 = tpu.matmul %31, %33, %cst_40 {dimension_numbers = #tpu.dot_dimension_numbers<[1], [0], [0], [1], [0, 0, 1, 1], [], []>} : vector<100x128xbf16>, vector<128x128xbf16>, vector<100x128xf32> -> vector<100x128xf32>
    %c0_41 = arith.constant 0 : index
    %c0_42 = arith.constant 0 : index
    %35 = vector.load %arg7[%c0_41, %c0_42] : memref<100x128xf32, #tpu.memory_space<vmem>>, vector<100x128xf32>
    %36 = arith.addf %35, %34 : vector<100x128xf32>
    %c0_43 = arith.constant 0 : index
    %c0_44 = arith.constant 0 : index
    %37 = vector.load %arg7[%c0_43, %c0_44] : memref<100x128xf32, #tpu.memory_space<vmem>>, vector<100x128xf32>
    tpu.vector_store %arg7[%c0_43, %c0_44], %36 {strides = array<i32>} : memref<100x128xf32, #tpu.memory_space<vmem>>, vector<100x128xf32>,
    %c0_45 = arith.constant 0 : index
    %c12 = arith.constant 12 : index
    %c0_46 = arith.constant 0 : index
    %38 = vector.load %arg2[%c0_45, %c12, %c0_46] : memref<1x122x128xbf16, #tpu.memory_space<vmem>>, vector<1x100x128xbf16>
    %39 = vector.shape_cast %38 : vector<1x100x128xbf16> to vector<100x128xbf16>
    %c5 = arith.constant 5 : index
    %c0_47 = arith.constant 0 : index
    %c0_48 = arith.constant 0 : index
    %40 = vector.load %arg3[%c5, %c0_47, %c0_48] : memref<9x128x128xbf16, #tpu.memory_space<vmem>>, vector<1x128x128xbf16>
    %41 = vector.shape_cast %40 : vector<1x128x128xbf16> to vector<128x128xbf16>
    %cst_49 = arith.constant dense<0.000000e+00> : vector<100x128xf32>
    %42 = tpu.matmul %39, %41, %cst_49 {dimension_numbers = #tpu.dot_dimension_numbers<[1], [0], [0], [1], [0, 0, 1, 1], [], []>} : vector<100x128xbf16>, vector<128x128xbf16>, vector<100x128xf32> -> vector<100x128xf32>
    %c0_50 = arith.constant 0 : index
    %c0_51 = arith.constant 0 : index
    %43 = vector.load %arg7[%c0_50, %c0_51] : memref<100x128xf32, #tpu.memory_space<vmem>>, vector<100x128xf32>
    %44 = arith.addf %43, %42 : vector<100x128xf32>
    %c0_52 = arith.constant 0 : index
    %c0_53 = arith.constant 0 : index
    %45 = vector.load %arg7[%c0_52, %c0_53] : memref<100x128xf32, #tpu.memory_space<vmem>>, vector<100x128xf32>
    tpu.vector_store %arg7[%c0_52, %c0_53], %44 {strides = array<i32>} : memref<100x128xf32, #tpu.memory_space<vmem>>, vector<100x128xf32>,
    %c0_54 = arith.constant 0 : index
    %c20 = arith.constant 20 : index
    %c0_55 = arith.constant 0 : index
    %46 = vector.load %arg2[%c0_54, %c20, %c0_55] : memref<1x122x128xbf16, #tpu.memory_space<vmem>>, vector<1x100x128xbf16>
    %47 = vector.shape_cast %46 : vector<1x100x128xbf16> to vector<100x128xbf16>
    %c6 = arith.constant 6 : index
    %c0_56 = arith.constant 0 : index
    %c0_57 = arith.constant 0 : index
    %48 = vector.load %arg3[%c6, %c0_56, %c0_57] : memref<9x128x128xbf16, #tpu.memory_space<vmem>>, vector<1x128x128xbf16>
    %49 = vector.shape_cast %48 : vector<1x128x128xbf16> to vector<128x128xbf16>
    %cst_58 = arith.constant dense<0.000000e+00> : vector<100x128xf32>
    %50 = tpu.matmul %47, %49, %cst_58 {dimension_numbers = #tpu.dot_dimension_numbers<[1], [0], [0], [1], [0, 0, 1, 1], [], []>} : vector<100x128xbf16>, vector<128x128xbf16>, vector<100x128xf32> -> vector<100x128xf32>
    %c0_59 = arith.constant 0 : index
    %c0_60 = arith.constant 0 : index
    %51 = vector.load %arg7[%c0_59, %c0_60] : memref<100x128xf32, #tpu.memory_space<vmem>>, vector<100x128xf32>
    %52 = arith.addf %51, %50 : vector<100x128xf32>
    %c0_61 = arith.constant 0 : index
    %c0_62 = arith.constant 0 : index
    %53 = vector.load %arg7[%c0_61, %c0_62] : memref<100x128xf32, #tpu.memory_space<vmem>>, vector<100x128xf32>
    tpu.vector_store %arg7[%c0_61, %c0_62], %52 {strides = array<i32>} : memref<100x128xf32, #tpu.memory_space<vmem>>, vector<100x128xf32>,
    %c0_63 = arith.constant 0 : index
    %c21 = arith.constant 21 : index
    %c0_64 = arith.constant 0 : index
    %54 = vector.load %arg2[%c0_63, %c21, %c0_64] : memref<1x122x128xbf16, #tpu.memory_space<vmem>>, vector<1x100x128xbf16>
    %55 = vector.shape_cast %54 : vector<1x100x128xbf16> to vector<100x128xbf16>
    %c7 = arith.constant 7 : index
    %c0_65 = arith.constant 0 : index
    %c0_66 = arith.constant 0 : index
    %56 = vector.load %arg3[%c7, %c0_65, %c0_66] : memref<9x128x128xbf16, #tpu.memory_space<vmem>>, vector<1x128x128xbf16>
    %57 = vector.shape_cast %56 : vector<1x128x128xbf16> to vector<128x128xbf16>
    %cst_67 = arith.constant dense<0.000000e+00> : vector<100x128xf32>
    %58 = tpu.matmul %55, %57, %cst_67 {dimension_numbers = #tpu.dot_dimension_numbers<[1], [0], [0], [1], [0, 0, 1, 1], [], []>} : vector<100x128xbf16>, vector<128x128xbf16>, vector<100x128xf32> -> vector<100x128xf32>
    %c0_68 = arith.constant 0 : index
    %c0_69 = arith.constant 0 : index
    %59 = vector.load %arg7[%c0_68, %c0_69] : memref<100x128xf32, #tpu.memory_space<vmem>>, vector<100x128xf32>
    %60 = arith.addf %59, %58 : vector<100x128xf32>
    %c0_70 = arith.constant 0 : index
    %c0_71 = arith.constant 0 : index
    %61 = vector.load %arg7[%c0_70, %c0_71] : memref<100x128xf32, #tpu.memory_space<vmem>>, vector<100x128xf32>
    tpu.vector_store %arg7[%c0_70, %c0_71], %60 {strides = array<i32>} : memref<100x128xf32, #tpu.memory_space<vmem>>, vector<100x128xf32>,
    %c0_72 = arith.constant 0 : index
    %c22 = arith.constant 22 : index
    %c0_73 = arith.constant 0 : index
    %62 = vector.load %arg2[%c0_72, %c22, %c0_73] : memref<1x122x128xbf16, #tpu.memory_space<vmem>>, vector<1x100x128xbf16>
    %63 = vector.shape_cast %62 : vector<1x100x128xbf16> to vector<100x128xbf16>
    %c8 = arith.constant 8 : index
    %c0_74 = arith.constant 0 : index
    %c0_75 = arith.constant 0 : index
    %64 = vector.load %arg3[%c8, %c0_74, %c0_75] : memref<9x128x128xbf16, #tpu.memory_space<vmem>>, vector<1x128x128xbf16>
    %65 = vector.shape_cast %64 : vector<1x128x128xbf16> to vector<128x128xbf16>
    %cst_76 = arith.constant dense<0.000000e+00> : vector<100x128xf32>
    %66 = tpu.matmul %63, %65, %cst_76 {dimension_numbers = #tpu.dot_dimension_numbers<[1], [0], [0], [1], [0, 0, 1, 1], [], []>} : vector<100x128xbf16>, vector<128x128xbf16>, vector<100x128xf32> -> vector<100x128xf32>
    %c0_77 = arith.constant 0 : index
    %c0_78 = arith.constant 0 : index
    %67 = vector.load %arg7[%c0_77, %c0_78] : memref<100x128xf32, #tpu.memory_space<vmem>>, vector<100x128xf32>
    %68 = arith.addf %67, %66 : vector<100x128xf32>
    %c0_79 = arith.constant 0 : index
    %c0_80 = arith.constant 0 : index
    %69 = vector.load %arg7[%c0_79, %c0_80] : memref<100x128xf32, #tpu.memory_space<vmem>>, vector<100x128xf32>
    tpu.vector_store %arg7[%c0_79, %c0_80], %68 {strides = array<i32>} : memref<100x128xf32, #tpu.memory_space<vmem>>, vector<100x128xf32>,
    %c0_81 = arith.constant 0 : index
    %c0_82 = arith.constant 0 : index
    %70 = vector.load %arg7[%c0_81, %c0_82] : memref<100x128xf32, #tpu.memory_space<vmem>>, vector<100x128xf32>
    %c0_83 = arith.constant 0 : index
    %c0_84 = arith.constant 0 : index
    %71 = vector.load %arg4[%c0_83, %c0_84] : memref<1x128xf32, #tpu.memory_space<vmem>>, vector<1x128xf32>
    %72 = vector.broadcast %71 : vector<1x128xf32> to vector<100x128xf32>
    %73 = arith.mulf %70, %72 : vector<100x128xf32>
    %c0_85 = arith.constant 0 : index
    %c0_86 = arith.constant 0 : index
    %74 = vector.load %arg5[%c0_85, %c0_86] : memref<1x128xf32, #tpu.memory_space<vmem>>, vector<1x128xf32>
    %75 = vector.broadcast %74 : vector<1x128xf32> to vector<100x128xf32>
    %76 = arith.addf %73, %75 : vector<100x128xf32>
    %cst_87 = arith.constant 0.000000e+00 : f32
    %77 = vector.broadcast %cst_87 : f32 to vector<100x128xf32>
    %78 = arith.maximumf %76, %77 : vector<100x128xf32>
    %79 = arith.truncf %78 : vector<100x128xf32> to vector<100x128xbf16>
    %c0_88 = arith.constant 0 : index
    %c0_89 = arith.constant 0 : index
    %c0_90 = arith.constant 0 : index
    %80 = vector.load %arg6[%c0_88, %c0_89, %c0_90] : memref<1x100x128xbf16, #tpu.memory_space<vmem>>, vector<1x100x128xbf16>
    %81 = vector.shape_cast %80 : vector<1x100x128xbf16> to vector<100x128xbf16>
    %82 = vector.shape_cast %79 : vector<100x128xbf16> to vector<1x100x128xbf16>
    tpu.vector_store %arg6[%c0_88, %c0_89, %c0_90], %82 {strides = array<i32>} : memref<1x100x128xbf16, #tpu.memory_space<vmem>>, vector<1x100x128xbf16>,
    return
  }
  func.func @transform_0(%arg0: i32, %arg1: i32) -> (i32, i32, i32) {
    %c0_i32 = arith.constant 0 : i32
    %c0_i32_0 = arith.constant 0 : i32
    %c0_i32_1 = arith.constant 0 : i32
    return %arg0, %c0_i32, %c0_i32_0 : i32, i32, i32
  }
  func.func @transform_1(%arg0: i32, %arg1: i32) -> (i32, i32, i32) {
    %c0_i32 = arith.constant 0 : i32
    %c0_i32_0 = arith.constant 0 : i32
    %c0_i32_1 = arith.constant 0 : i32
    return %c0_i32, %c0_i32_0, %arg1 : i32, i32, i32
  }
  func.func @transform_2(%arg0: i32, %arg1: i32) -> (i32, i32) {
    %c0_i32 = arith.constant 0 : i32
    %c0_i32_0 = arith.constant 0 : i32
    return %c0_i32, %arg1 : i32, i32
  }
  func.func @transform_3(%arg0: i32, %arg1: i32) -> (i32, i32) {
    %c0_i32 = arith.constant 0 : i32
    %c0_i32_0 = arith.constant 0 : i32
    return %c0_i32, %arg1 : i32, i32
  }
  func.func @transform_4(%arg0: i32, %arg1: i32) -> (i32, i32, i32) {
    %c0_i32 = arith.constant 0 : i32
    %c0_i32_0 = arith.constant 0 : i32
    return %arg0, %c0_i32, %arg1 : i32, i32, i32
  }
}

</mosaic_0001>

<bundles_post_ra>
// kernel: tpu_custom_call.1
= control target key start
LH: loop header
LB: loop body
LE: loop exit
PB: predicated region body
PF: predicated region fallthrough
CT: control target
= control target key end

     0   :  { %9 = vsyncpa [#allocation4], 0  ;;  %s4182_s0 = inlined_call_operand.hbm [shape: bf16[1,122,128], index: 0, kind: input, shape index: {}]   ;;  %s4183_s1 = inlined_call_operand.hbm [shape: bf16[9,128,128], index: 1, kind: input, shape index: {}]   ;;  %s4184_s2 = inlined_call_operand.vmem [shape: f32[1,128], index: 2, kind: input, shape index: {}]   ;;  %s4185_s3 = inlined_call_operand.vmem [shape: f32[1,128], index: 3, kind: input, shape index: {}]   ;;  %s4186_s4 = inlined_call_operand.hbm [shape: bf16[1,100,128], index: 4, kind: output, shape index: {}]  }
   0x1   :  { %10 = vsyncpa [#allocation7], 0 }
   0x2   :  { %11 = vsyncpa [#allocation5], 0  ;;  %s3802_s15 = smov [#allocation3]   ;;  %s3730_s19 = scalar_lea.hbm %s4182_s0, 1024 }
   0x3   :  { %s17_s16 = sshll.u32 %s3802_s15, 4  ;;  %p3731_p0 = scmp.ne.s32.totalorder %s4182_s0, %s3730_s19  ;;  %s18_s16 = int_to_ptr.vmem [resolvable:$true] %s17_s16 }
   0x4   :  { %p3734_p1 = scmp.lt.u32.totalorder %s3730_s19, %s4182_s0 }
   0x6   :  { %p3736_p2 = pnand %p3734_p1, %p3731_p0 }
   0x8   :  { %3739 = shalt.err (!%p3736_p2)
}
   0x9   :  { %s3740_s24 = scalar_lea.vmem %s18_s16, 1024  ;;  %p3745_p4 = scmp.lt.s32.totalorder %s18_s16, %s18_s16 }
   0xa   :  { %p3741_p3 = scmp.ne.s32.totalorder %s18_s16, %s3740_s24  ;;  %p3746_p5 = scmp.lt.s32.totalorder %s3740_s24, %s3740_s24 }
   0xc   :  { %p3747_p6 = por %p3746_p5, %p3745_p4 }
   0xe   :  { %p3748_p7 = pnand %p3747_p6, %p3741_p3 }
  0x10   :  { %3751 = shalt.err (!%p3748_p7)
}
  0x11   :  { %s3803_s25 = smov 64   ;;  %s3804_s26 = smov 4  }
  0x12   :  { %23 = dma.hbm_to_vmem [thread:$0]  %s4182_s0, 1024, %s18_s16, [#allocation4], %s3803_s25, %s3803_s25, %s3804_s26  }
  0x13   :  { %s3805_s29 = smov [#allocation6]   ;;  %s3752_s7 = scalar_lea.hbm %s4183_s1, 9216 }
  0x14   :  { %s29_s30 = sshll.u32 %s3805_s29, 4  ;;  %p3753_p8 = scmp.ne.s32.totalorder %s4183_s1, %s3752_s7  ;;  %s30_s30 = int_to_ptr.vmem [resolvable:$true] %s29_s30 }
  0x15   :  { %p3756_p9 = scmp.lt.u32.totalorder %s3752_s7, %s4183_s1 }
  0x17   :  { %p3758_p10 = pnand %p3756_p9, %p3753_p8 }
  0x19   :  { %3761 = shalt.err (!%p3758_p10)
}
  0x1a   :  { %s3762_s12 = scalar_lea.vmem %s30_s30, 9216  ;;  %p3767_p12 = scmp.lt.s32.totalorder %s30_s30, %s30_s30 }
  0x1b   :  { %p3763_p11 = scmp.ne.s32.totalorder %s30_s30, %s3762_s12  ;;  %p3768_p13 = scmp.lt.s32.totalorder %s3762_s12, %s3762_s12 }
  0x1d   :  { %p3769_p0 = por %p3768_p13, %p3767_p12 }
  0x1f   :  { %p3770_p1 = pnand %p3769_p0, %p3763_p11 }
  0x21   :  { %3773 = shalt.err (!%p3770_p1)
}
  0x22   :  { %35 = dma.hbm_to_vmem [thread:$0]  %s4183_s1, 9216, %s30_s30, [#allocation7], %s3803_s25, %s3803_s25, %s3804_s26  }
  0x23   :  { %3796 = dma.done.wait [#allocation4], 1024  }
  0x24   :  { %3797 = vsyncadd [#allocation4], 4294966272 }
  0x25   :  { %3798 = dma.done.wait [#allocation7], 9216  }
  0x26   :  { %3799 = vsyncadd [#allocation7], 4294958080  ;;  %v3806_v0 = vmov 0.0   ;;  %vm3807_vm0 = vmmov 0   ;;  %v3587_v1 = vld [vmem:[#allocation6] sm:$0xff]   ;;  %v3589_v3 = vld [vmem:[#allocation6 + $0x8] sm:$0xff]  }
  0x27   :  { %2964 = vmatprep.subr.bf16.mxu1 %v3806_v0  ;;  %3140 = vmatprep.subr.bf16.mxu0 %v3806_v0  ;;  %v3588_v2 = vld [vmem:[#allocation6 + $0x100] sm:$0xff]   ;;  %v3590_v4 = vld [vmem:[#allocation6 + $0x108] sm:$0xff]   ;;  %v3591_v5 = vld [vmem:[#allocation6 + $0x10] sm:$0xff]   ;;  %vm1146_vm1 = vsmask.f32 6400  ;;  %vm1454_vm2 = vcmask 1045504  }
  0x28   :  { %2980 = vmatprep.mubr.msk.bf16.mxu1 %vm3807_vm0, %v3806_v0  ;;  %3156 = vmatprep.mubr.msk.bf16.mxu0 %vm3807_vm0, %v3806_v0  ;;  %v3592_v6 = vld [vmem:[#allocation6 + $0x110] sm:$0xff]   ;;  %v3593_v7 = vld [vmem:[#allocation6 + $0x18] sm:$0xff]   ;;  %v3595_v9 = vld [vmem:[#allocation6 + $0x20] sm:$0xff]   ;;  %vm328_vm3 = vsmask.f32 7424  ;;  %vm629_vm4 = vcmask 1046528  }
  0x29   :  { %2965 = vmatpush3.bf16.msra.mxu1 %v3587_v1  ;;  %3141 = vmatpush3.bf16.msra.mxu0 %v3588_v2  ;;  %v3594_v8 = vld [vmem:[#allocation6 + $0x118] sm:$0xff]   ;;  %v3596_v10 = vld [vmem:[#allocation6 + $0x120] sm:$0xff]   ;;  %v3597_v11 = vld [vmem:[#allocation6 + $0x28] sm:$0xff]   ;;  %vm1974_vm5 = vsmask.f32 5376  ;;  %vm2285_vm6 = vcmask 1044480  }
  0x2a   :  { %2966 = vmatprep.subr.bf16.mxu1 %v3806_v0  ;;  %3142 = vmatprep.subr.bf16.mxu0 %v3806_v0  ;;  %v3604_v12 = vld [vmem:[#allocation3 + $0x4] sm:$0xfe]   ;;  %v3605_v13 = vld [vmem:[#allocation3 + $0xc] sm:$0xff]   ;;  %v3601_v25 = vld [vmem:[#allocation6 + $0x38] sm:$0xff]  }
  0x2b   :  { %v3598_v14 = vld [vmem:[#allocation6 + $0x128] sm:$0xff]   ;;  %v1148_v15 = vshrl.u32 %v3604_v12, 16  ;;  %v1151_v16 = vshll.u32 %v3604_v12, 16  ;;  %v1156_v17 = vshrl.u32 %v3605_v13, 16  ;;  %v1159_v18 = vshll.u32 %v3605_v13, 16  ;;  %v3599_v19 = vld [vmem:[#allocation6 + $0x30] sm:$0xff]  }
  0x2c   :  { %v3600_v20 = vld [vmem:[#allocation6 + $0x130] sm:$0xff]   ;;  %v3602_v27 = vld [vmem:[#allocation6 + $0x138] sm:$0xff]   ;;  %v3603_v30 = vld [vmem:[#allocation3] sm:$0xff]  }
  0x2d   :  { %2967 = vmatpush3.bf16.msra.mxu1 %v3589_v3  ;;  %3143 = vmatpush3.bf16.msra.mxu0 %v3590_v4  ;;  %v1150_v21 = vrot.slane %v1148_v15, 1  ;;  %v1153_v22 = vrot.slane %v1151_v16, 2  ;;  %v1158_v23 = vrot.slane %v1156_v17, 1  ;;  %v1161_v24 = vrot.slane %v1159_v18, 2  ;;  %v3611_v26 = vld [vmem:[#allocation3 + $0x14] sm:$0xff]   ;;  %v3606_v31 = vld [vmem:[#allocation6 + $0x40] sm:$0xff]  }
  0x2e   :  { %2968 = vmatprep.subr.bf16.mxu1 %v3806_v0  ;;  %3144 = vmatprep.subr.bf16.mxu0 %v3806_v0  ;;  %v1165_v32 = vshrl.u32 %v3611_v26, 16  ;;  %v1168_v33 = vshll.u32 %v3611_v26, 16  ;;  %v3607_v34 = vld [vmem:[#allocation6 + $0x140] sm:$0xff]   ;;  %v3608_v39 = vld [vmem:[#allocation6 + $0x148] sm:$0xff]   ;;  %v3612_v45 = vld [vmem:[#allocation6 + $0x150] sm:$0xff]  }
  0x2f   :  { %v1154_v28 = vor.u32 %v1153_v22, %v1150_v21  ;;  %v1162_v29 = vor.u32 %v1161_v24, %v1158_v23  ;;  %v3616_v37 = vld [vmem:[#allocation3 + $0x1c] sm:$0xff]   ;;  %v3610_v40 = vld [vmem:[#allocation6 + $0x48] sm:$0xff]   ;;  %v3614_v46 = vld [vmem:[#allocation6 + $0x50] sm:$0xff]  }
  0x30   :  { %v1167_v35 = vrot.slane %v1165_v32, 1  ;;  %v1170_v36 = vrot.slane %v1168_v33, 2  ;;  %v1174_v41 = vshrl.u32 %v3616_v37, 16  ;;  %v1177_v42 = vshll.u32 %v3616_v37, 16  ;;  %v3609_v44 = vld [vmem:[#allocation3 + $0x8] sm:$0xff]   ;;  %v3613_v51 = vld [vmem:[#allocation6 + $0x158] sm:$0xff]  }
  0x31   :  { %2969 = vmatpush3.bf16.msra.mxu1 %v3591_v5  ;;  %3145 = vmatpush3.bf16.msra.mxu0 %v3592_v6  ;;  %v1163_v38 = vsel %vm1146_vm1, %v1154_v28, %v1162_v29  ;;  %v3621_v49 = vld [vmem:[#allocation3 + $0x24] sm:$0xff]   ;;  %v3619_v52 = vld [vmem:[#allocation6 + $0x58] sm:$0xff]   ;;  %v3615_v56 = vld [vmem:[#allocation3 + $0x10] sm:$0xff]  }
  0x32   :  { %2970 = vmatprep.subr.bf16.mxu1 %v3806_v0  ;;  %3146 = vmatprep.subr.bf16.mxu0 %v3806_v0  ;;  %v1171_v43 = vor.u32 %v1170_v36, %v1167_v35  ;;  %v1176_v47 = vrot.slane %v1174_v41, 1  ;;  %v1179_v48 = vrot.slane %v1177_v42, 2  ;;  %v1183_v53 = vshrl.u32 %v3621_v49, 16  ;;  %v3617_v57 = vld [vmem:[#allocation6 + $0x160] sm:$0xff]   ;;  %v3618_v62 = vld [vmem:[#allocation6 + $0x168] sm:$0xff]   ;;  %v3620_v63 = vld [vmem:[#allocation3 + $0x18] sm:$0xff]  }
  0x33   :  { %v1186_v54 = vshll.u32 %v3621_v49, 16  ;;  %v3623_v61 = vld [vmem:[#allocation6 + $0x60] sm:$0xff]   ;;  %v3628_v2 = vld [vmem:[#allocation6 + $0x68] sm:$0xff]   ;;  %v3622_v3 = vld [vmem:[#allocation6 + $0x170] sm:$0xff]  }
  0x34   :  { %v1172_v50 = vsel %vm1146_vm1, %v1162_v29, %v1171_v43  ;;  %v1180_v55 = vor.u32 %v1179_v48, %v1176_v47  ;;  %v1185_v59 = vrot.slane %v1183_v53, 1  ;;  %v3626_v4 = vld [vmem:[#allocation3 + $0x4] sm:$0xfc]   ;;  %v3627_v5 = vld [vmem:[#allocation3 + $0xc] sm:$0xff]   ;;  %v3634_v12 = vld [vmem:[#allocation6 + $0x78] sm:$0xff]  }
  0x35   :  { %2971 = vmatpush3.bf16.msra.mxu1 %v3593_v7  ;;  %3147 = vmatpush3.bf16.msra.mxu0 %v3594_v8  ;;  %v1188_v60 = vrot.slane %v1186_v54, 2  ;;  %v3631_v7 = vld [vmem:[#allocation6 + $0x70] sm:$0xff]   ;;  %v3624_v8 = vld [vmem:[#allocation6 + $0x178] sm:$0xff]   ;;  %v3639_v15 = vld [vmem:[#allocation6 + $0x180] sm:$0xff]  }
  0x36   :  { %2972 = vmatprep.subr.bf16.mxu1 %v3806_v0  ;;  %3148 = vmatprep.subr.bf16.mxu0 %v3806_v0  ;;  %v1181_v58 = vsel %vm1146_vm1, %v1171_v43, %v1180_v55  ;;  %v3630_v13 = vld [vmem:[#allocation3 + $0x14] sm:$0xff]   ;;  %v3640_v17 = vld [vmem:[#allocation6 + $0x188] sm:$0xff]   ;;  %v3649_v33 = vld [vmem:[#allocation6 + $0x1a0] sm:$0xff]  }
  0x37   :  { %v3909_v1 = vor.u32 %v1188_v60, %v1185_v59  ;;  %v1458_v16 = vrot.slane %v3630_v13, 2  ;;  %v3629_v18 = vld [vmem:[#allocation3 + $0x28] sm:$0xff]   ;;  %v3644_v22 = vld [vmem:[#allocation6 + $0x190] sm:$0xff]   ;;  %v3647_v49 = vld [vmem:[#allocation3 + $0x18] sm:$0xff]  }
  0x38   :  { %v3636_v23 = vld [vmem:[#allocation3 + $0x8] sm:$0xff]   ;;  %v3641_v35 = vld [vmem:[#allocation3 + $0x10] sm:$0xff]   ;;  %v3652_v60 = vld [vmem:[#allocation3 + $0x20] sm:$0xff]  }
  0x39   :  { %2973 = vmatpush3.bf16.msra.mxu1 %v3595_v9  ;;  %3149 = vmatpush3.bf16.msra.mxu0 %v3596_v10  ;;  %v1190_v6 = vsel %vm1146_vm1, %v1180_v55, %v3909_v1  ;;  %v1455_v9 = vrot.slane %v3626_v4, 2  ;;  %v1456_v10 = vrot.slane %v3627_v5, 2  ;;  %v337_v29 = vshll.u32 %v3636_v23, 16  ;;  %v3646_v54 = vld [vmem:[#allocation6 + $0x90] sm:$0xff]   ;;  %v3654_v5 = vld [vmem:[#allocation6 + $0xa0] sm:$0xff]  }
  0x3a   :  { %2974 = vmatprep.subr.bf16.mxu1 %v3806_v0  ;;  %3150 = vmatprep.subr.bf16.mxu0 %v3806_v0  ;;  %v341_v41 = vshrl.u32 %v3636_v23, 16  ;;  %v345_v42 = vshll.u32 %v3641_v35, 16  ;;  %v353_v55 = vshll.u32 %v3647_v49, 16 }
  0x3b   :  { %v1459_v21 = vsel %vm1454_vm2, %v1456_v10, %v1458_v16 }
  0x3c   :  { %v347_v48 = vrot.slane %v345_v42, 1  ;;  %v355_v59 = vrot.slane %v353_v55, 1  ;;  %v3667_v42 = vld [vmem:[#allocation3 + $0x28] sm:$0xff]  }
  0x3d   :  { %2975 = vmatpush3.bf16.msra.mxu1 %v3597_v11  ;;  %3151 = vmatpush3.bf16.msra.mxu0 %v3598_v14  ;;  %v3625_v11 = vld [vmem:[#allocation3 + $0x20] sm:$0xff]   ;;  %v1457_v14 = vsel %vm1454_vm2, %v1455_v9, %v1456_v10  ;;  %v3659_v9 = vld [vmem:[#allocation6 + $0xa8] sm:$0xff]   ;;  %v365_v10 = vshrl.u32 %v3652_v60, 16 }
  0x3e   :  { %2976 = vmatprep.subr.bf16.mxu1 %v3806_v0  ;;  %3152 = vmatprep.subr.bf16.mxu0 %v3806_v0 }
  0x41   :  { %2977 = vmatpush3.bf16.msra.mxu1 %v3599_v19  ;;  %3153 = vmatpush3.bf16.msra.mxu0 %v3600_v20  ;;  %v3633_v19 = vld [vmem:[#allocation3 + $0x1c] sm:$0xff]  }
  0x42   :  { %2978 = vmatprep.subr.bf16.mxu1 %v3806_v0  ;;  %3154 = vmatprep.subr.bf16.mxu0 %v3806_v0  ;;  %v3635_v20 = vld [vmem:[#allocation3] sm:$0xff]   ;;  %v1460_v26 = vrot.slane %v3633_v19, 2 }
  0x43   :  { %v332_v24 = vshll.u32 %v3635_v20, 16  ;;  %v330_v28 = vshrl.u32 %v3635_v20, 16 }
  0x44   :  { %v1461_v32 = vsel %vm1454_vm2, %v1458_v16, %v1460_v26  ;;  %v3660_v16 = vld [vmem:[#allocation3 + $0x30] ss:$0 sps:$4 sm:$0x77]  }
  0x45   :  { %2979 = vmatpush3.bf16.msra.mxu1 %v3601_v25  ;;  %3155 = vmatpush3.bf16.msra.mxu0 %v3602_v27  ;;  %v3632_v25 = vld [vmem:[#allocation3 + $0x30] ss:$0 sps:$4 sm:$0x33]   ;;  %v3645_v27 = vld [vmem:[#allocation6 + $0x198] sm:$0xff]   ;;  %v377_v23 = vshll.u32 %v3660_v16, 16 }
  0x46   :  { %3008 = vmatprep.subr.bf16.mxu1 %v3806_v0  ;;  %3184 = vmatprep.subr.bf16.mxu0 %v3806_v0 }
  0x48   :  { %2981 = vmatmul.mubr.bf16.vlgmr.msra.gmra.mrb[0].mxu1 %v3603_v30  ;;  %3157 = vmatmul.mubr.bf16.vlgmr.msra.gmra.mrb[0].mxu0 %v1163_v38  ;;  %v334_v30 = vrot.slane %v332_v24, 1  ;;  %v3650_v38 = vld [vmem:[#allocation6 + $0x1a8] sm:$0xff]  }
  0x49   :  { %3009 = vmatpush3.bf16.msra.mxu1 %v3606_v31  ;;  %3185 = vmatpush3.bf16.msra.mxu0 %v3607_v34  ;;  %v3637_v31 = vld [vmem:[#allocation3 + $0x24] sm:$0xff]   ;;  %v339_v34 = vrot.slane %v337_v29, 1  ;;  %v379_v29 = vrot.slane %v377_v23, 1  ;;  %v3691_v23 = vld [vmem:[#allocation3 + $0x18] sm:$0xff]  }
  0x4a   :  { %2984 = vmatprep.mubr.msk.bf16.mxu1 %vm3807_vm0, %v3806_v0  ;;  %3186 = vmatprep.subr.bf16.mxu0 %v3806_v0  ;;  %v335_v36 = vor.u32 %v334_v30, %v330_v28  ;;  %v1462_v37 = vrot.slane %v3637_v31, 2  ;;  %v3670_v31 = vld [vmem:[#allocation6 + $0x1c8] sm:$0xff]  }
  0x4b   :  { %3010 = vmatprep.subr.bf16.mxu1 %v3806_v0  ;;  %3160 = vmatprep.mubr.msk.bf16.mxu0 %vm3807_vm0, %v3806_v0  ;;  %v343_v47 = vor.u32 %v341_v41, %v339_v34  ;;  %v3665_v41 = vld [vmem:[#allocation3] sm:$0xfe]  }
  0x4c   :  { %v1463_v43 = vsel %vm1454_vm2, %v1460_v26, %v1462_v37  ;;  %v3661_v26 = vld [vmem:[#allocation3 + $0x18] sm:$0xff]  }
  0x4d   :  { %3011 = vmatpush3.bf16.msra.mxu1 %v3610_v40  ;;  %3187 = vmatpush3.bf16.msra.mxu0 %v3608_v39  ;;  %v3638_v39 = vld [vmem:[#allocation6 + $0x80] sm:$0xff]   ;;  %v340_v40 = vsel %vm328_vm3, %v335_v36, %v339_v34  ;;  %v348_v53 = vsel %vm328_vm3, %v343_v47, %v347_v48  ;;  %v1716_v30 = vrot.slane %v3661_v26, 2  ;;  %v381_v36 = vshrl.u32 %v3660_v16, 16  ;;  %v3689_v16 = vld [vmem:[#allocation6 + $0xe8] sm:$0xff]  }
  0x4e   :  { %3012 = vmatprep.subr.bf16.mxu1 %v3806_v0  ;;  %3188 = vmatprep.subr.bf16.mxu0 %v3806_v0  ;;  %v3663_v34 = vld [vmem:[#allocation3 + $0x20] sm:$0xff]   ;;  %v1720_v47 = vrot.slane %v3667_v42, 2  ;;  %v3699_v42 = vld [vmem:[#allocation6 + $0x208] sm:$0xff]  }
  0x50   :  { %2985 = vmatmul.mubr.bf16.gmra.mrb[4].mxu1 %v3609_v44  ;;  %3161 = vmatmul.mubr.bf16.gmra.mrb[4].mxu0 %v1172_v50  ;;  %v3643_v44 = vld [vmem:[#allocation3 + $0x2c] sm:$0xff]  }
  0x51   :  { %2988 = vmatprep.mubr.msk.bf16.mxu1 %vm3807_vm0, %v3806_v0  ;;  %3189 = vmatpush3.bf16.msra.mxu0 %v3612_v45  ;;  %v3653_v45 = vld [vmem:[#allocation6 + $0x1b0] sm:$0xff]   ;;  %v1464_v50 = vrot.slane %v3643_v44, 2 }
  0x52   :  { %3013 = vmatpush3.bf16.msra.mxu1 %v3614_v46  ;;  %3190 = vmatprep.subr.bf16.mxu0 %v3806_v0  ;;  %v3642_v46 = vld [vmem:[#allocation6 + $0x88] sm:$0xff]  }
  0x53   :  { %3164 = vmatprep.mubr.msk.bf16.mxu0 %vm3807_vm0, %v3806_v0  ;;  %3014 = vmatprep.subr.bf16.mxu1 %v3806_v0 }
  0x55   :  { %3191 = vmatpush3.bf16.msra.mxu0 %v3613_v51  ;;  %v3655_v51 = vld [vmem:[#allocation6 + $0x1b8] sm:$0xff]  }
  0x56   :  { %3015 = vmatpush3.bf16.msra.mxu1 %v3619_v52  ;;  %3192 = vmatprep.subr.bf16.mxu0 %v3806_v0  ;;  %v349_v52 = vshrl.u32 %v3641_v35, 16  ;;  %v3674_v35 = vld [vmem:[#allocation6 + $0x1d0] sm:$0xff]  }
  0x57   :  { %3016 = vmatprep.subr.bf16.mxu1 %v3806_v0 }
  0x58   :  { %2989 = vmatmul.mubr.bf16.gmra.mrb[8].mxu1 %v3615_v56  ;;  %3165 = vmatmul.mubr.bf16.gmra.mrb[8].mxu0 %v1181_v58  ;;  %v1465_v56 = vsel %vm1454_vm2, %v1462_v37, %v1464_v50  ;;  %v351_v58 = vor.u32 %v349_v52, %v347_v48  ;;  %v1718_v37 = vrot.slane %v3663_v34, 2  ;;  %v3680_v48 = vld [vmem:[#allocation6 + $0x1e8] sm:$0xff]  }
  0x59   :  { %2992 = vmatprep.mubr.msk.bf16.mxu1 %vm3807_vm0, %v3806_v0  ;;  %3193 = vmatpush3.bf16.msra.mxu0 %v3617_v57  ;;  %v3648_v57 = vld [vmem:[#allocation3 + $0x34] ss:$0 sps:$4 sm:$0xff]  }
  0x5a   :  { %3168 = vmatprep.mubr.msk.bf16.mxu0 %vm3807_vm0, %v3806_v0  ;;  %3194 = vmatprep.subr.bf16.mxu0 %v3806_v0  ;;  %v1719_v44 = vsel %vm1454_vm2, %v1716_v30, %v1718_v37  ;;  %v1721_v52 = vsel %vm1454_vm2, %v1718_v37, %v1720_v47  ;;  %v3698_v37 = vld [vmem:[#allocation6 + $0x200] sm:$0xff]  }
  0x5b   :  { %3017 = vmatpush3.bf16.msra.mxu1 %v3623_v61  ;;  %v1466_v61 = vrot.slane %v3648_v57, 2 }
  0x5c   :  { %3018 = vmatprep.subr.bf16.mxu1 %v3806_v0 }
  0x5d   :  { %3195 = vmatpush3.bf16.msra.mxu0 %v3618_v62  ;;  %v3651_v62 = vld [vmem:[#allocation6 + $0x98] sm:$0xff]   ;;  %v1467_v4 = vsel %vm1454_vm2, %v1464_v50, %v1466_v61  ;;  %v3668_v50 = vld [vmem:[#allocation6 + $0xc0] sm:$0xff]  }
  0x5e   :  { %3196 = vmatprep.subr.bf16.mxu0 %v3806_v0 }
  0x5f   :  { %3019 = vmatpush3.bf16.msra.mxu1 %v3628_v2  ;;  %v357_v2 = vshrl.u32 %v3647_v49, 16 }
  0x60   :  { %2993 = vmatmul.mubr.bf16.gmra.mrb[12].mxu1 %v3620_v63  ;;  %3020 = vmatprep.subr.bf16.mxu1 %v3806_v0  ;;  %v356_v63 = vsel %vm328_vm3, %v351_v58, %v355_v59  ;;  %v3685_v58 = vld [vmem:[#allocation6 + $0x1f8] sm:$0xff]  }
  0x61   :  { %3169 = vmatmul.mubr.bf16.gmra.mrb[12].mxu0 %v1190_v6  ;;  %2996 = vmatprep.mubr.msk.bf16.mxu1 %vm3807_vm0, %v3806_v0  ;;  %v359_v6 = vor.u32 %v357_v2, %v355_v59 }
  0x62   :  { %3197 = vmatpush3.bf16.msra.mxu0 %v3622_v3  ;;  %3200 = vmatprep.mubr.msk.bf16.mxu0 %vm3807_vm0, %v3806_v0  ;;  %v361_v3 = vshll.u32 %v3652_v60, 16  ;;  %v3677_v60 = vld [vmem:[#allocation3 + $0x18] sm:$0xff]  }
  0x63   :  { %3198 = vmatprep.subr.bf16.mxu0 %v3806_v0  ;;  %3021 = vmatpush3.bf16.msra.mxu1 %v3631_v7  ;;  %v635_v2 = vrot.slane %v3677_v60, 1 }
  0x64   :  { %3022 = vmatprep.subr.bf16.mxu1 %v3806_v0  ;;  %v363_v7 = vrot.slane %v361_v3, 1 }
  0x66   :  { %3199 = vmatpush3.bf16.msra.mxu0 %v3624_v8  ;;  %v3656_v8 = vld [vmem:[#allocation3 + $0x28] sm:$0xff]  }
  0x67   :  { %3023 = vmatpush3.bf16.msra.mxu1 %v3634_v12  ;;  %3228 = vmatprep.subr.bf16.mxu0 %v3806_v0  ;;  %v364_v12 = vsel %vm328_vm3, %v359_v6, %v363_v7  ;;  %v369_v13 = vshll.u32 %v3656_v8, 16  ;;  %v3682_v6 = vld [vmem:[#allocation3 + $0x20] sm:$0xff]  }
  0x68   :  { %2997 = vmatmul.mubr.bf16.gmra.mrb[16].mxu1 %v3625_v11  ;;  %3052 = vmatprep.subr.bf16.mxu1 %v3806_v0  ;;  %v3657_v11 = vld [vmem:[#allocation3 + $0x8] sm:$0xfc]  }
  0x69   :  { %3201 = vmatmul.mubr.bf16.vlgmr.msra.gmra.mrb[0].mxu0 %v1457_v14  ;;  %3000 = vmatprep.mubr.msk.bf16.mxu1 %vm3807_vm0, %v3806_v0  ;;  %v3658_v14 = vld [vmem:[#allocation3 + $0x10] sm:$0xff]   ;;  %v1713_v19 = vrot.slane %v3657_v11, 2  ;;  %v637_v11 = vrot.slane %v3682_v6, 1 }
  0x6a   :  { %3204 = vmatprep.mubr.msk.bf16.mxu0 %vm3807_vm0, %v3806_v0  ;;  %3229 = vmatpush3.bf16.msra.mxu0 %v3639_v15  ;;  %v3662_v15 = vld [vmem:[#allocation6 + $0xb0] sm:$0xff]   ;;  %v1714_v20 = vrot.slane %v3658_v14, 2 }
  0x6b   :  { %3230 = vmatprep.subr.bf16.mxu0 %v3806_v0 }
  0x6e   :  { %3231 = vmatpush3.bf16.msra.mxu0 %v3640_v17  ;;  %v367_v17 = vor.u32 %v365_v10, %v363_v7  ;;  %v3688_v10 = vld [vmem:[#allocation3 + $0x10] sm:$0xff]  }
  0x6f   :  { %3232 = vmatprep.subr.bf16.mxu0 %v3806_v0  ;;  %v1984_v14 = vshrl.u32 %v3688_v10, 16 }
  0x70   :  { %3001 = vmatmul.mubr.bf16.gmra.mrb[20].mxu1 %v3629_v18  ;;  %v371_v18 = vrot.slane %v369_v13, 1 }
  0x71   :  { %3205 = vmatmul.mubr.bf16.gmra.mrb[4].mxu0 %v1459_v21  ;;  %3004 = vmatprep.mubr.msk.bf16.mxu1 %vm3807_vm0, %v3806_v0  ;;  %v3664_v21 = vld [vmem:[#allocation6 + $0xb8] sm:$0xff]  }
  0x72   :  { %3208 = vmatprep.mubr.msk.bf16.mxu0 %vm3807_vm0, %v3806_v0  ;;  %3233 = vmatpush3.bf16.msra.mxu0 %v3644_v22  ;;  %v373_v22 = vshrl.u32 %v3656_v8, 16  ;;  %v372_v24 = vsel %vm328_vm3, %v367_v17, %v371_v18  ;;  %v3684_v8 = vld [vmem:[#allocation6 + $0xe0] sm:$0xff]   ;;  %v638_v17 = vsel %vm629_vm4, %v635_v2, %v637_v11 }
  0x73   :  { %3234 = vmatprep.subr.bf16.mxu0 %v3806_v0 }
  0x74   :  { %v375_v28 = vor.u32 %v373_v22, %v371_v18  ;;  %v3686_v18 = vld [vmem:[#allocation3 + $0x28] sm:$0xff]  }
  0x76   :  { %3235 = vmatpush3.bf16.msra.mxu0 %v3645_v27  ;;  %v3669_v27 = vld [vmem:[#allocation6 + $0x1c0] sm:$0xff]  }
  0x77   :  { %3236 = vmatprep.subr.bf16.mxu0 %v3806_v0 }
  0x78   :  { %3005 = vmatmul.mubr.bf16.gmra.mrb[24].mxu1 %v3632_v25  ;;  %v1715_v25 = vsel %vm1454_vm2, %v1713_v19, %v1714_v20 }
  0x79   :  { %3209 = vmatmul.mubr.bf16.gmra.mrb[8].mxu0 %v1461_v32  ;;  %3024 = vmatprep.mubr.msk.bf16.mxu1 %vm3807_vm0, %v3806_v0  ;;  %v380_v32 = vsel %vm328_vm3, %v375_v28, %v379_v29  ;;  %v1993_v28 = vshrl.u32 %v3691_v23, 16 }
  0x7a   :  { %3212 = vmatprep.mubr.msk.bf16.mxu0 %vm3807_vm0, %v3806_v0  ;;  %3237 = vmatpush3.bf16.msra.mxu0 %v3649_v33  ;;  %v1717_v33 = vsel %vm1454_vm2, %v1714_v20, %v1716_v30  ;;  %v3694_v30 = vld [vmem:[#allocation6 + $0xf8] sm:$0xff]  }
  0x7b   :  { %3238 = vmatprep.subr.bf16.mxu0 %v3806_v0  ;;  %v1995_v34 = vrot.slane %v1993_v28, 2 }
  0x7e   :  { %3239 = vmatpush3.bf16.msra.mxu0 %v3650_v38  ;;  %v3675_v38 = vld [vmem:[#allocation6 + $0x1d8] sm:$0xff]  }
  0x7f   :  { %3240 = vmatprep.subr.bf16.mxu0 %v3806_v0 }
  0x80   :  { %3025 = vmatmul.mubr.bf16.vlgmr.msra.gmra.mrb[0].mxu1 %v340_v40  ;;  %v383_v40 = vor.u32 %v381_v36, %v379_v29  ;;  %v1996_v29 = vshll.u32 %v3691_v23, 16  ;;  %v3693_v36 = vld [vmem:[#allocation3 + $0x20] sm:$0xff]  }
  0x81   :  { %3213 = vmatmul.mubr.bf16.gmra.mrb[12].mxu0 %v1463_v43  ;;  %3053 = vmatpush3.bf16.msra.mxu1 %v3638_v39  ;;  %v3666_v39 = vld [vmem:[#allocation3 + $0x8] sm:$0xff]   ;;  %v3679_v43 = vld [vmem:[#allocation6 + $0x1e0] sm:$0xff]  }
  0x82   :  { %3028 = vmatprep.mubr.msk.bf16.mxu1 %vm3807_vm0, %v3806_v0  ;;  %3054 = vmatprep.subr.bf16.mxu1 %v3806_v0 }
  0x83   :  { %3216 = vmatprep.mubr.msk.bf16.mxu0 %vm3807_vm0, %v3806_v0  ;;  %3241 = vmatpush3.bf16.msra.mxu0 %v3653_v45  ;;  %v630_v45 = vrot.slane %v3665_v41, 1  ;;  %v2005_v41 = vshll.u32 %v3693_v36, 16 }
  0x84   :  { %3242 = vmatprep.subr.bf16.mxu0 %v3806_v0 }
  0x85   :  { %3055 = vmatpush3.bf16.msra.mxu1 %v3642_v46  ;;  %v631_v46 = vrot.slane %v3666_v39, 1 }
  0x86   :  { %3056 = vmatprep.subr.bf16.mxu1 %v3806_v0 }
  0x87   :  { %3243 = vmatpush3.bf16.msra.mxu0 %v3655_v51  ;;  %v632_v49 = vsel %vm629_vm4, %v630_v45, %v631_v46  ;;  %v3671_v51 = vld [vmem:[#allocation3 + $0x10] sm:$0xff]  }
  0x88   :  { %3029 = vmatmul.mubr.bf16.gmra.mrb[4].mxu1 %v348_v53  ;;  %3272 = vmatprep.subr.bf16.mxu0 %v3806_v0  ;;  %v3673_v53 = vld [vmem:[#allocation3 + $0x30] sm:$0xff]   ;;  %v633_v55 = vrot.slane %v3671_v51, 1 }
  0x89   :  { %3217 = vmatmul.mubr.bf16.gmra.mrb[16].mxu0 %v1465_v56  ;;  %3032 = vmatprep.mubr.msk.bf16.mxu1 %vm3807_vm0, %v3806_v0  ;;  %v3672_v56 = vld [vmem:[#allocation6 + $0xc8] sm:$0xff]   ;;  %v1722_v57 = vrot.slane %v3673_v53, 2 }
  0x8a   :  { %3057 = vmatpush3.bf16.msra.mxu1 %v3646_v54  ;;  %3220 = vmatprep.mubr.msk.bf16.mxu0 %vm3807_vm0, %v3806_v0  ;;  %v3683_v54 = vld [vmem:[#allocation6 + $0x1f0] sm:$0xff]   ;;  %v634_v59 = vsel %vm629_vm4, %v631_v46, %v633_v55  ;;  %v2007_v46 = vrot.slane %v2005_v41, 3  ;;  %v3695_v53 = vld [vmem:[#allocation3 + $0x4] sm:$0xfe]  }
  0x8b   :  { %3058 = vmatprep.subr.bf16.mxu1 %v3806_v0  ;;  %v888_v60 = vrot.slane %v3695_v53, 1 }
  0x8e   :  { %3059 = vmatpush3.bf16.msra.mxu1 %v3651_v62  ;;  %v3676_v62 = vld [vmem:[#allocation6 + $0xd0] sm:$0xff]  }
  0x8f   :  { %3060 = vmatprep.subr.bf16.mxu1 %v3806_v0 }
  0x90   :  { %3033 = vmatmul.mubr.bf16.gmra.mrb[8].mxu1 %v356_v63  ;;  %v3678_v63 = vld [vmem:[#allocation3 + $0x38] ss:$0 sps:$4 sm:$0xff]  }
  0x91   :  { %3221 = vmatmul.mubr.bf16.gmra.mrb[20].mxu0 %v1467_v4  ;;  %3036 = vmatprep.mubr.msk.bf16.mxu1 %vm3807_vm0, %v3806_v0  ;;  %v1724_v3 = vrot.slane %v3678_v63, 2  ;;  %v3681_v4 = vld [vmem:[#allocation6 + $0xd8] sm:$0xff]  }
  0x92   :  { %3224 = vmatprep.mubr.msk.bf16.mxu0 %vm3807_vm0, %v3806_v0  ;;  %3061 = vmatpush3.bf16.msra.mxu1 %v3654_v5  ;;  %v636_v5 = vsel %vm629_vm4, %v633_v55, %v635_v2 }
  0x93   :  { %3062 = vmatprep.subr.bf16.mxu1 %v3806_v0  ;;  %v1725_v7 = vsel %vm1454_vm2, %v1722_v57, %v1724_v3 }
  0x96   :  { %3063 = vmatpush3.bf16.msra.mxu1 %v3659_v9  ;;  %v3687_v9 = vld [vmem:[#allocation3 + $0x8] sm:$0xfc]  }
  0x97   :  { %3064 = vmatprep.subr.bf16.mxu1 %v3806_v0  ;;  %v1979_v13 = vshll.u32 %v3687_v9, 16 }
  0x98   :  { %3037 = vmatmul.mubr.bf16.gmra.mrb[12].mxu1 %v364_v12  ;;  %v1976_v12 = vshrl.u32 %v3687_v9, 16  ;;  %v3705_v9 = vld [vmem:[#allocation3 + $0x38] sm:$0x1f]  }
  0x99   :  { %3225 = vmatmul.mubr.bf16.gmra.mrb[24].mxu0 %v1466_v61  ;;  %3040 = vmatprep.mubr.msk.bf16.mxu1 %vm3807_vm0, %v3806_v0  ;;  %v1723_v61 = vsel %vm1454_vm2, %v1720_v47, %v1722_v57  ;;  %v1981_v20 = vrot.slane %v1979_v13, 3  ;;  %v3697_v47 = vld [vmem:[#allocation3 + $0x28] sm:$0xff]  }
  0x9a   :  { %3244 = vmatprep.mubr.msk.bf16.mxu0 %vm3807_vm0, %v3806_v0  ;;  %3065 = vmatpush3.bf16.msra.mxu1 %v3662_v15  ;;  %v1987_v15 = vshll.u32 %v3688_v10, 16  ;;  %v1978_v19 = vrot.slane %v1976_v12, 2  ;;  %v2014_v51 = vshll.u32 %v3697_v47, 16  ;;  %v3709_v10 = vld [vmem:[#allocation6 + $0x230] sm:$0xff]  }
  0x9b   :  { %3066 = vmatprep.subr.bf16.mxu1 %v3806_v0 }
  0x9c   :  { %v1989_v22 = vrot.slane %v1987_v15, 3  ;;  %v1982_v26 = vor.u32 %v1981_v20, %v1978_v19  ;;  %v2016_v57 = vrot.slane %v2014_v51, 3  ;;  %v2032_v15 = vshll.u32 %v3705_v9, 16  ;;  %v3704_v19 = vld [vmem:[#allocation3 + $0x1c] sm:$0xff]  }
  0x9d   :  { %v893_v23 = vrot.slane %v3704_v19, 1  ;;  %v3716_v51 = vld [vmem:[#allocation3 + $0x20] sm:$0xff]  }
  0x9e   :  { %3067 = vmatpush3.bf16.msra.mxu1 %v3664_v21  ;;  %v1986_v21 = vrot.slane %v1984_v14, 2  ;;  %v2029_v14 = vshrl.u32 %v3705_v9, 16 }
  0x9f   :  { %3096 = vmatprep.subr.bf16.mxu1 %v3806_v0 }
  0xa0   :  { %3041 = vmatmul.mubr.bf16.gmra.mrb[16].mxu1 %v372_v24  ;;  %v3692_v24 = vld [vmem:[#allocation6 + $0xf0] sm:$0xff]  }
  0xa1   :  { %3245 = vmatmul.mubr.bf16.vlgmr.msra.gmra.mrb[0].mxu0 %v1715_v25  ;;  %3044 = vmatprep.mubr.msk.bf16.mxu1 %vm3807_vm0, %v3806_v0  ;;  %v639_v25 = vrot.slane %v3686_v18, 1  ;;  %v3723_v18 = vld [vmem:[#allocation6 + $0x108] sm:$0xff]  }
  0xa2   :  { %3248 = vmatprep.mubr.msk.bf16.mxu0 %vm3807_vm0, %v3806_v0  ;;  %3273 = vmatpush3.bf16.msra.mxu0 %v3669_v27  ;;  %v1990_v27 = vor.u32 %v1989_v22, %v1986_v21  ;;  %v2031_v21 = vrot.slane %v2029_v14, 2  ;;  %v2034_v22 = vrot.slane %v2032_v15, 3 }
  0xa3   :  { %3274 = vmatprep.subr.bf16.mxu0 %v3806_v0 }
  0xa6   :  { %3275 = vmatpush3.bf16.msra.mxu0 %v3670_v31  ;;  %v640_v31 = vsel %vm629_vm4, %v637_v11, %v639_v25  ;;  %v3722_v11 = vld [vmem:[#allocation6 + $0x100] sm:$0xff]  }
  0xa7   :  { %3276 = vmatprep.subr.bf16.mxu0 %v3806_v0 }
  0xa8   :  { %3045 = vmatmul.mubr.bf16.gmra.mrb[20].mxu1 %v380_v32  ;;  %v3690_v32 = vld [vmem:[#allocation3 + $0x30] ss:$0 sps:$4 sm:$0x77]  }
  0xa9   :  { %3249 = vmatmul.mubr.bf16.gmra.mrb[4].mxu0 %v1717_v33  ;;  %3048 = vmatprep.mubr.msk.bf16.mxu1 %vm3807_vm0, %v3806_v0  ;;  %v1991_v33 = vsel %vm1974_vm5, %v1982_v26, %v1990_v27 }
  0xaa   :  { %3252 = vmatprep.mubr.msk.bf16.mxu0 %vm3807_vm0, %v3806_v0  ;;  %3277 = vmatpush3.bf16.msra.mxu0 %v3674_v35  ;;  %v1998_v35 = vrot.slane %v1996_v29, 3  ;;  %v3725_v29 = vld [vmem:[#allocation6 + $0x118] sm:$0xff]  }
  0xab   :  { %3278 = vmatprep.subr.bf16.mxu0 %v3806_v0 }
  0xac   :  { %v1999_v39 = vor.u32 %v1998_v35, %v1995_v34  ;;  %v3712_v34 = vld [vmem:[#allocation3 + $0x8] sm:$0xf8]   ;;  %v3713_v35 = vld [vmem:[#allocation3 + $0x10] sm:$0xff]  }
  0xae   :  { %3279 = vmatpush3.bf16.msra.mxu0 %v3675_v38  ;;  %v641_v38 = vrot.slane %v3690_v32, 1 }
  0xaf   :  { %3280 = vmatprep.subr.bf16.mxu0 %v3806_v0 }
  0xb0   :  { %3049 = vmatmul.mubr.bf16.gmra.mrb[28].mxu1 %v383_v40  ;;  %v2002_v40 = vshrl.u32 %v3693_v36, 16  ;;  %v3727_v36 = vld [vmem:[#allocation6 + $0x128] sm:$0xff]  }
  0xb1   :  { %3253 = vmatmul.mubr.bf16.gmra.mrb[8].mxu0 %v1719_v44  ;;  %3068 = vmatprep.mubr.msk.bf16.mxu1 %vm3807_vm0, %v3806_v0  ;;  %v2000_v44 = vsel %vm1974_vm5, %v1990_v27, %v1999_v39  ;;  %v3708_v27 = vld [vmem:[#allocation3 + $0x24] sm:$0xff]  }
  0xb2   :  { %3256 = vmatprep.mubr.msk.bf16.mxu0 %vm3807_vm0, %v3806_v0  ;;  %3281 = vmatpush3.bf16.msra.mxu0 %v3679_v43  ;;  %v642_v43 = vsel %vm629_vm4, %v639_v25, %v641_v38  ;;  %v2004_v45 = vrot.slane %v2002_v40, 2  ;;  %v2035_v25 = vor.u32 %v2034_v22, %v2031_v21  ;;  %v3728_v40 = vld [vmem:[#allocation6 + $0x130] sm:$0xff]  }
  0xb3   :  { %3282 = vmatprep.subr.bf16.mxu0 %v3806_v0 }
  0xb6   :  { %3283 = vmatpush3.bf16.msra.mxu0 %v3680_v48  ;;  %v3702_v48 = vld [vmem:[#allocation6 + $0x210] sm:$0xff]  }
  0xb7   :  { %3284 = vmatprep.subr.bf16.mxu0 %v3806_v0 }
  0xb8   :  { %3069 = vmatmul.mubr.bf16.vlgmr.msra.gmra.mrb[0].mxu1 %v632_v49  ;;  %v2008_v49 = vor.u32 %v2007_v46, %v2004_v45  ;;  %v3729_v45 = vld [vmem:[#allocation6 + $0x138] sm:$0xff]  }
  0xb9   :  { %3257 = vmatmul.mubr.bf16.gmra.mrb[12].mxu0 %v1721_v52  ;;  %3097 = vmatpush3.bf16.msra.mxu1 %v3668_v50  ;;  %v2011_v50 = vshrl.u32 %v3697_v47, 16  ;;  %v3703_v52 = vld [vmem:[#allocation6 + $0x218] sm:$0xff]  }
  0xba   :  { %3072 = vmatprep.mubr.msk.bf16.mxu1 %vm3807_vm0, %v3806_v0  ;;  %3098 = vmatprep.subr.bf16.mxu1 %v3806_v0  ;;  %v2009_v55 = vsel %vm1974_vm5, %v1999_v39, %v2008_v49  ;;  %v2287_v39 = vrot.slane %v3713_v35, 3 }
  0xbb   :  { %3260 = vmatprep.mubr.msk.bf16.mxu0 %vm3807_vm0, %v3806_v0  ;;  %3285 = vmatpush3.bf16.msra.mxu0 %v3683_v54  ;;  %v3696_v54 = vld [vmem:[#allocation3 + $0xc] sm:$0xff]  }
  0xbc   :  { %3286 = vmatprep.subr.bf16.mxu0 %v3806_v0 }
  0xbd   :  { %3099 = vmatpush3.bf16.msra.mxu1 %v3672_v56  ;;  %v2013_v56 = vrot.slane %v2011_v50, 2 }
  0xbe   :  { %3100 = vmatprep.subr.bf16.mxu1 %v3806_v0 }
  0xbf   :  { %3287 = vmatpush3.bf16.msra.mxu0 %v3685_v58  ;;  %v3701_v58 = vld [vmem:[#allocation3 + $0x30] sm:$0xff]  }
  0xc0   :  { %3073 = vmatmul.mubr.bf16.gmra.mrb[4].mxu1 %v634_v59  ;;  %3316 = vmatprep.subr.bf16.mxu0 %v3806_v0  ;;  %v3706_v59 = vld [vmem:[#allocation6 + $0x220] sm:$0xff]   ;;  %v2020_v63 = vshrl.u32 %v3701_v58, 16  ;;  %v2023_v2 = vshll.u32 %v3701_v58, 16 }
  0xc1   :  { %3261 = vmatmul.mubr.bf16.gmra.mrb[16].mxu0 %v1723_v61  ;;  %3076 = vmatprep.mubr.msk.bf16.mxu1 %vm3807_vm0, %v3806_v0  ;;  %v889_v61 = vrot.slane %v3696_v54, 1  ;;  %v2291_v54 = vrot.slane %v3716_v51, 3 }
  0xc2   :  { %3101 = vmatpush3.bf16.msra.mxu1 %v3676_v62  ;;  %3264 = vmatprep.mubr.msk.bf16.mxu0 %vm3807_vm0, %v3806_v0  ;;  %v2017_v62 = vor.u32 %v2016_v57, %v2013_v56  ;;  %v3719_v57 = vld [vmem:[#allocation3 + $0x34] ss:$0 sps:$4 sm:$0xff]  }
  0xc3   :  { %3102 = vmatprep.subr.bf16.mxu1 %v3806_v0 }
  0xc4   :  { %v2018_v6 = vsel %vm1974_vm5, %v2008_v49, %v2017_v62  ;;  %v3717_v49 = vld [vmem:[#allocation3 + $0x2c] sm:$0xff]  }
  0xc5   :  { %v1195_v53 = vshll.u32 %v3717_v49, 16 }
  0xc6   :  { %3103 = vmatpush3.bf16.msra.mxu1 %v3681_v4  ;;  %v890_v4 = vsel %vm629_vm4, %v888_v60, %v889_v61 }
  0xc7   :  { %3104 = vmatprep.subr.bf16.mxu1 %v3806_v0  ;;  %v1197_v56 = vrot.slane %v1195_v53, 2 }
  0xc8   :  { %3077 = vmatmul.mubr.bf16.gmra.mrb[8].mxu1 %v636_v5  ;;  %v3700_v5 = vld [vmem:[#allocation3 + $0x14] sm:$0xff]  }
  0xc9   :  { %3265 = vmatmul.mubr.bf16.gmra.mrb[20].mxu0 %v1725_v7  ;;  %3080 = vmatprep.mubr.msk.bf16.mxu1 %vm3807_vm0, %v3806_v0  ;;  %v2022_v7 = vrot.slane %v2020_v63, 2  ;;  %v891_v12 = vrot.slane %v3700_v5, 1 }
  0xca   :  { %3268 = vmatprep.mubr.msk.bf16.mxu0 %vm3807_vm0, %v3806_v0  ;;  %3105 = vmatpush3.bf16.msra.mxu1 %v3684_v8  ;;  %v2025_v8 = vrot.slane %v2023_v2, 3 }
  0xcb   :  { %3106 = vmatprep.subr.bf16.mxu1 %v3806_v0  ;;  %v894_v26 = vsel %vm629_vm4, %v891_v12, %v893_v23 }
  0xcc   :  { %v2026_v13 = vor.u32 %v2025_v8, %v2022_v7 }
  0xce   :  { %3107 = vmatpush3.bf16.msra.mxu1 %v3689_v16  ;;  %v3710_v16 = vld [vmem:[#allocation6 + $0x238] sm:$0xff]   ;;  %v2027_v20 = vsel %vm1974_vm5, %v2017_v62, %v2026_v13  ;;  %v2036_v28 = vsel %vm1974_vm5, %v2026_v13, %v2035_v25  ;;  %v1204_v62 = vshll.u32 %v3719_v57, 16 }
  0xcf   :  { %3108 = vmatprep.subr.bf16.mxu1 %v3806_v0 }
  0xd0   :  { %3081 = vmatmul.mubr.bf16.gmra.mrb[12].mxu1 %v638_v17  ;;  %v892_v17 = vsel %vm629_vm4, %v889_v61, %v891_v12  ;;  %v1201_v61 = vshrl.u32 %v3719_v57, 16  ;;  %v4131_v57 = vld [vmem:[%s4184_s2] ss:$0 sm:$0xff]  ;;  %s3808_s2 = smov [#allocation8]  }
  0xd1   :  { %3269 = vmatmul.mubr.bf16.gmra.mrb[28].mxu0 %v1724_v3  ;;  %3084 = vmatprep.mubr.msk.bf16.mxu1 %vm3807_vm0, %v3806_v0  ;;  %v3707_v3 = vld [vmem:[#allocation6 + $0x228] sm:$0xff]  }
  0xd2   :  { %3288 = vmatprep.mubr.msk.bf16.mxu0 %vm3807_vm0, %v3806_v0  ;;  %3109 = vmatpush3.bf16.msra.mxu1 %v3692_v24  ;;  %v3724_v24 = vld [vmem:[#allocation6 + $0x110] sm:$0xff]  }
  0xd3   :  { %3110 = vmatprep.subr.bf16.mxu1 %v3806_v0 }
  0xd6   :  { %3111 = vmatpush3.bf16.msra.mxu1 %v3694_v30  ;;  %v895_v30 = vrot.slane %v3708_v27, 1 }
  0xd7   :  { %3360 = vmatprep.subr.bf16.mxu1 %v3806_v0 }
  0xd8   :  { %3085 = vmatmul.mubr.bf16.gmra.mrb[16].mxu1 %v640_v31  ;;  %v3726_v31 = vld [vmem:[#allocation6 + $0x120] sm:$0xff]   ;;  %v896_v32 = vsel %vm629_vm4, %v893_v23, %v895_v30 }
  0xd9   :  { %3289 = vmatmul.mubr.bf16.vlgmr.msra.gmra.mrb[0].mxu0 %v1991_v33  ;;  %3088 = vmatprep.mubr.msk.bf16.mxu1 %vm3807_vm0, %v3806_v0  ;;  %v3711_v33 = vld [vmem:[#allocation3 + $0x2c] sm:$0xff]  }
  0xda   :  { %3292 = vmatprep.mubr.msk.bf16.mxu0 %vm3807_vm0, %v3806_v0  ;;  %3317 = vmatpush3.bf16.msra.mxu0 %v3698_v37  ;;  %v897_v37 = vrot.slane %v3711_v33, 1 }
  0xdb   :  { %3318 = vmatprep.subr.bf16.mxu0 %v3806_v0 }
  0xdc   :  { %v898_v41 = vsel %vm629_vm4, %v895_v30, %v897_v37 }
  0xde   :  { %3319 = vmatpush3.bf16.msra.mxu0 %v3699_v42  ;;  %v3714_v42 = vld [vmem:[#allocation3 + $0x34] ss:$0 sps:$4 sm:$0x77]  }
  0xdf   :  { %3320 = vmatprep.subr.bf16.mxu0 %v3806_v0  ;;  %v899_v46 = vrot.slane %v3714_v42, 1 }
  0xe0   :  { %3089 = vmatmul.mubr.bf16.gmra.mrb[20].mxu1 %v642_v43 }
  0xe1   :  { %3293 = vmatmul.mubr.bf16.gmra.mrb[4].mxu0 %v2000_v44  ;;  %3092 = vmatprep.mubr.msk.bf16.mxu1 %vm3807_vm0, %v3806_v0  ;;  %v3715_v44 = vld [vmem:[#allocation3 + $0x18] sm:$0xff]  }
  0xe2   :  { %3296 = vmatprep.mubr.msk.bf16.mxu0 %vm3807_vm0, %v3806_v0  ;;  %3321 = vmatpush3.bf16.msra.mxu0 %v3702_v48  ;;  %v2289_v47 = vrot.slane %v3715_v44, 3  ;;  %v900_v48 = vsel %vm629_vm4, %v897_v37, %v899_v46 }
  0xe3   :  { %3322 = vmatprep.subr.bf16.mxu0 %v3806_v0 }
  0xe4   :  { %v2290_v50 = vsel %vm2285_vm6, %v2287_v39, %v2289_v47  ;;  %v2292_v58 = vsel %vm2285_vm6, %v2289_v47, %v2291_v54 }
  0xe6   :  { %3323 = vmatpush3.bf16.msra.mxu0 %v3703_v52  ;;  %v1192_v52 = vshrl.u32 %v3717_v49, 16 }
  0xe7   :  { %3324 = vmatprep.subr.bf16.mxu0 %v3806_v0 }
  0xe8   :  { %3093 = vmatmul.mubr.bf16.gmra.mrb[32].mxu1 %v641_v38  ;;  %v2286_v38 = vrot.slane %v3712_v34, 3 }
  0xe9   :  { %3297 = vmatmul.mubr.bf16.gmra.mrb[8].mxu0 %v2009_v55  ;;  %3112 = vmatprep.mubr.msk.bf16.mxu1 %vm3807_vm0, %v3806_v0  ;;  %v1194_v55 = vrot.slane %v1192_v52, 1 }
  0xea   :  { %3300 = vmatprep.mubr.msk.bf16.mxu0 %vm3807_vm0, %v3806_v0  ;;  %3325 = vmatpush3.bf16.msra.mxu0 %v3706_v59  ;;  %v2288_v43 = vsel %vm2285_vm6, %v2286_v38, %v2287_v39  ;;  %v3718_v59 = vld [vmem:[#allocation3 + $0x28] sm:$0xff]  }
  0xeb   :  { %3326 = vmatprep.subr.bf16.mxu0 %v3806_v0  ;;  %v1198_v60 = vor.u32 %v1197_v56, %v1194_v55  ;;  %v2293_v63 = vrot.slane %v3718_v59, 3 }
  0xed   :  { %v1199_v2 = vsel %vm1146_vm1, %v3909_v1, %v1198_v60  ;;  %v2294_v5 = vsel %vm2285_vm6, %v2291_v54, %v2293_v63  ;;  %v3721_v1 = vld [vmem:[#allocation3 + $0x38] sm:$0x1f]  }
  0xee   :  { %3327 = vmatpush3.bf16.msra.mxu0 %v3707_v3  ;;  %v1203_v3 = vrot.slane %v1201_v61, 1  ;;  %v4136_v61 = vld [vmem:[%s4185_s3] ss:$0 sm:$0xff]  ;;  %s2618_s3 = sshll.u32 %s3808_s2, 4  ;;  %s2619_s3 = int_to_ptr.vmem [resolvable:$true] %s2618_s3 }
  0xef   :  { %3328 = vmatprep.subr.bf16.mxu0 %v3806_v0  ;;  %s3774_s17 = scalar_lea.vmem %s2619_s3, 832  ;;  %p3779_p3 = scmp.lt.s32.totalorder %s2619_s3, %s2619_s3 }
  0xf0   :  { %3113 = vmatmul.mubr.bf16.vlgmr.msra.gmra.mrb[0].mxu1 %v890_v4  ;;  %v1206_v4 = vrot.slane %v1204_v62, 2  ;;  %p3775_p2 = scmp.ne.s32.totalorder %s2619_s3, %s3774_s17  ;;  %p3780_p4 = scmp.lt.s32.totalorder %s3774_s17, %s3774_s17 }
  0xf1   :  { %3301 = vmatmul.mubr.bf16.gmra.mrb[12].mxu0 %v2018_v6  ;;  %3368 = vmatpush3.bf16.msra.mxu1 %v3722_v11  ;;  %v3720_v6 = vld [vmem:[#allocation3 + $0x30] sm:$0xff]   ;;  %v2297_v11 = vrot.slane %v3721_v1, 3 }
  0xf2   :  { %3116 = vmatprep.mubr.msk.bf16.mxu1 %vm3807_vm0, %v3806_v0  ;;  %3361 = vmatprep.subr.bf16.mxu1 %v3806_v0  ;;  %v1207_v7 = vor.u32 %v1206_v4, %v1203_v3  ;;  %v2295_v8 = vrot.slane %v3720_v6, 3  ;;  %p3781_p5 = por %p3780_p4, %p3779_p3 }
  0xf3   :  { %3304 = vmatprep.mubr.msk.bf16.mxu0 %vm3807_vm0, %v3806_v0  ;;  %3329 = vmatpush3.bf16.msra.mxu0 %v3709_v10 }
  0xf4   :  { %3330 = vmatprep.subr.bf16.mxu0 %v3806_v0  ;;  %v1208_v9 = vsel %vm1146_vm1, %v1198_v60, %v1207_v7  ;;  %v2296_v10 = vsel %vm2285_vm6, %v2293_v63, %v2295_v8  ;;  %v2298_v12 = vsel %vm2285_vm6, %v2295_v8, %v2297_v11  ;;  %p3782_p6 = pnand %p3781_p5, %p3775_p2 }
  0xf5   :  { %3369 = vmatpush3.bf16.msra.mxu1 %v3723_v18 }
  0xf6   :  { %3362 = vmatprep.subr.bf16.mxu1 %v3806_v0 }
  0xf7   :  { %3331 = vmatpush3.bf16.msra.mxu0 %v3710_v16 }
  0xf8   :  { %3117 = vmatmul.mubr.bf16.gmra.mrb[4].mxu1 %v892_v17 }
  0xf9   :  { %3305 = vmatmul.mubr.bf16.gmra.mrb[16].mxu0 %v2027_v20  ;;  %3120 = vmatprep.mubr.msk.bf16.mxu1 %vm3807_vm0, %v3806_v0 }
  0xfa   :  { %3370 = vmatpush3.bf16.msra.mxu1 %v3724_v24  ;;  %3308 = vmatprep.mubr.msk.bf16.mxu0 %vm3807_vm0, %v3806_v0 }
  0xfb   :  { %3363 = vmatprep.subr.bf16.mxu1 %v3806_v0 }
  0xfe   :  { %3371 = vmatpush3.bf16.msra.mxu1 %v3725_v29 }
  0xff   :  { %3364 = vmatprep.subr.bf16.mxu1 %v3806_v0 }
 0x100   :  { %3121 = vmatmul.mubr.bf16.gmra.mrb[8].mxu1 %v894_v26 }
 0x101   :  { %3309 = vmatmul.mubr.bf16.gmra.mrb[20].mxu0 %v2036_v28  ;;  %3124 = vmatprep.mubr.msk.bf16.mxu1 %vm3807_vm0, %v3806_v0 }
 0x102   :  { %3312 = vmatprep.mubr.msk.bf16.mxu0 %vm3807_vm0, %v3806_v0  ;;  %3372 = vmatpush3.bf16.msra.mxu1 %v3726_v31 }
 0x103   :  { %3365 = vmatprep.subr.bf16.mxu1 %v3806_v0 }
 0x106   :  { %3373 = vmatpush3.bf16.msra.mxu1 %v3727_v36 }
 0x107   :  { %3366 = vmatprep.subr.bf16.mxu1 %v3806_v0 }
 0x108   :  { %3125 = vmatmul.mubr.bf16.gmra.mrb[12].mxu1 %v896_v32 }
 0x109   :  { %3313 = vmatmul.mubr.bf16.gmra.mrb[32].mxu0 %v2035_v25  ;;  %3128 = vmatprep.mubr.msk.bf16.mxu1 %vm3807_vm0, %v3806_v0 }
 0x10a   :  { %3332 = vmatprep.mubr.msk.bf16.mxu0 %vm3807_vm0, %v3806_v0  ;;  %3374 = vmatpush3.bf16.msra.mxu1 %v3728_v40 }
 0x10b   :  { %3367 = vmatprep.subr.bf16.mxu1 %v3806_v0 }
 0x10e   :  { %3375 = vmatpush3.bf16.msra.mxu1 %v3729_v45 }
 0x110   :  { %3129 = vmatmul.mubr.bf16.gmra.mrb[16].mxu1 %v898_v41 }
 0x111   :  { %3333 = vmatmul.mubr.bf16.vlgmr.msra.gmra.mrb[0].mxu0 %v2288_v43  ;;  %3132 = vmatprep.mubr.msk.bf16.mxu1 %vm3807_vm0, %v3806_v0 }
 0x112   :  { %3336 = vmatprep.mubr.msk.bf16.mxu0 %vm3807_vm0, %v3806_v0 }
 0x118   :  { %3133 = vmatmul.mubr.bf16.gmra.mrb[20].mxu1 %v900_v48 }
 0x119   :  { %3337 = vmatmul.mubr.bf16.gmra.mrb[4].mxu0 %v2290_v50  ;;  %3136 = vmatprep.mubr.msk.bf16.mxu1 %vm3807_vm0, %v3806_v0 }
 0x11a   :  { %3340 = vmatprep.mubr.msk.bf16.mxu0 %vm3807_vm0, %v3806_v0 }
 0x120   :  { %3137 = vmatmul.mubr.bf16.gmra.mrb[36].mxu1 %v899_v46 }
 0x121   :  { %3341 = vmatmul.mubr.bf16.gmra.mrb[8].mxu0 %v2292_v58  ;;  %3172 = vmatprep.mubr.msk.bf16.mxu1 %vm3807_vm0, %v3806_v0 }
 0x122   :  { %3344 = vmatprep.mubr.msk.bf16.mxu0 %vm3807_vm0, %v3806_v0 }
 0x128   :  { %3173 = vmatmul.mubr.bf16.vlgmr.msra.gmra.mrb[16].mxu1 %v1199_v2 }
 0x129   :  { %3345 = vmatmul.mubr.bf16.gmra.mrb[12].mxu0 %v2294_v5  ;;  %3176 = vmatprep.mubr.msk.bf16.mxu1 %vm3807_vm0, %v3806_v0 }
 0x12a   :  { %3348 = vmatprep.mubr.msk.bf16.mxu0 %vm3807_vm0, %v3806_v0 }
 0x130   :  { %3177 = vmatmul.mubr.bf16.gmra.mrb[20].mxu1 %v1208_v9 }
 0x131   :  { %3349 = vmatmul.mubr.bf16.gmra.mrb[16].mxu0 %v2296_v10  ;;  %3180 = vmatprep.mubr.msk.bf16.mxu1 %vm3807_vm0, %v3806_v0 }
 0x132   :  { %3352 = vmatprep.mubr.msk.bf16.mxu0 %vm3807_vm0, %v3806_v0 }
 0x138   :  { %3181 = vmatmul.mubr.bf16.gmra.mrb[40].mxu1 %v1207_v7 }
 0x139   :  { %3353 = vmatmul.mubr.bf16.gmra.mrb[20].mxu0 %v2298_v12 }
 0x13a   :  { %3356 = vmatprep.mubr.msk.bf16.mxu0 %vm3807_vm0, %v3806_v0 }
 0x141   :  { %3357 = vmatmul.mubr.bf16.gmra.mrb[36].mxu0 %v2297_v11 }
 0x14b   :  { %v246_v13 = vpop.f32.mrb[24].mxu1 }
 0x14c   :  { %264 = vst [vmem:[#allocation2 + $0x60] sm:$0xf] %v246_v13  ;;  %v3006_v14 = vpop.f32.mrb[25].mxu1 }
 0x14d   :  { %v249_v15 = vpop.f32.mrb[26].mxu1 }
 0x14e   :  { %v3007_v16 = vpop.f32.mrb[27].mxu1 }
 0x153   :  { %v539_v22 = vld [vmem:[#allocation2 + $0x60] sm:$0xf] }
 0x16c   :  { %v4122_v17 = vpop.f32.mrb[24].mxu0 }
 0x16d   :  { %v3226_v18 = vpop.f32.mrb[25].mxu0 }
 0x16e   :  { %v1608_v19 = vpop.f32.mrb[26].mxu0 }
 0x16f   :  { %v3227_v20 = vpop.f32.mrb[27].mxu0 }
 0x183   :  { %v521_v21 = vpop.f32.mrb[28].mxu1 }
 0x184   :  { %v552_v23 = vadd.f32 %v539_v22, %v521_v21  ;;  %v3050_v24 = vpop.f32.mrb[29].mxu1 }
 0x185   :  { %v524_v25 = vpop.f32.mrb[30].mxu1 }
 0x186   :  { %565 = vst [vmem:[#allocation2 + $0x60] sm:$0xf] %v552_v23  ;;  %v3051_v26 = vpop.f32.mrb[31].mxu1 }
 0x18d   :  { %v798_v31 = vld [vmem:[#allocation2 + $0x60] sm:$0xf] }
 0x1a4   :  { %v4124_v27 = vpop.f32.mrb[28].mxu0 }
 0x1a5   :  { %v3270_v0 = vpop.f32.mrb[29].mxu0 }
 0x1a6   :  { %v1866_v28 = vpop.f32.mrb[30].mxu0 }
 0x1a7   :  { %v3271_v29 = vpop.f32.mrb[31].mxu0 }
 0x1bb   :  { %v780_v30 = vpop.f32.mrb[32].mxu1 }
 0x1bc   :  { %v811_v32 = vadd.f32 %v798_v31, %v780_v30  ;;  %v3094_v33 = vpop.f32.mrb[33].mxu1 }
 0x1bd   :  { %v783_v34 = vpop.f32.mrb[34].mxu1 }
 0x1be   :  { %824 = vst [vmem:[#allocation2 + $0x60] sm:$0xf] %v811_v32  ;;  %v3095_v35 = vpop.f32.mrb[35].mxu1 }
 0x1c3   :  { %v990_v36 = vpop.f32.mrb[0].mxu1 }
 0x1c4   :  { %v3114_v37 = vpop.f32.mrb[1].mxu1 }
 0x1c5   :  { %v993_v38 = vpop.f32.mrb[2].mxu1  ;;  %v1056_v19 = vld [vmem:[#allocation2 + $0x60] sm:$0xf] }
 0x1c6   :  { %v3115_v39 = vpop.f32.mrb[3].mxu1 }
 0x1cb   :  { %v998_v40 = vpop.f32.mrb[4].mxu1 }
 0x1cc   :  { %v3118_v41 = vpop.f32.mrb[5].mxu1 }
 0x1cd   :  { %v1001_v42 = vpop.f32.mrb[6].mxu1 }
 0x1ce   :  { %v3119_v43 = vpop.f32.mrb[7].mxu1 }
 0x1d3   :  { %v1006_v44 = vpop.f32.mrb[8].mxu1 }
 0x1d4   :  { %v3122_v45 = vpop.f32.mrb[9].mxu1 }
 0x1d5   :  { %v1009_v46 = vpop.f32.mrb[10].mxu1 }
 0x1d6   :  { %v3123_v47 = vpop.f32.mrb[11].mxu1 }
 0x1db   :  { %v1014_v48 = vpop.f32.mrb[12].mxu1 }
 0x1dc   :  { %v3126_v49 = vpop.f32.mrb[13].mxu1  ;;  %v4126_v50 = vpop.f32.mrb[32].mxu0 }
 0x1dd   :  { %v1017_v51 = vpop.f32.mrb[14].mxu1  ;;  %v3314_v52 = vpop.f32.mrb[33].mxu0 }
 0x1de   :  { %v3127_v53 = vpop.f32.mrb[15].mxu1  ;;  %v2177_v54 = vpop.f32.mrb[34].mxu0 }
 0x1df   :  { %v3315_v55 = vpop.f32.mrb[35].mxu0 }
 0x1e4   :  { %v2388_v56 = vpop.f32.mrb[0].mxu0 }
 0x1e5   :  { %v3378_v58 = vadd.f32 %v2388_v56, %v990_v36  ;;  %v3334_v59 = vpop.f32.mrb[1].mxu0 }
 0x1e6   :  { %v2391_v60 = vpop.f32.mrb[2].mxu0 }
 0x1e7   :  { %v3381_v62 = vadd.f32 %v2391_v60, %v993_v38  ;;  %v3335_v63 = vpop.f32.mrb[3].mxu0  ;;  %v2501_v2 = vmul.f32 %v3378_v58, %v4131_v57 }
 0x1e9   :  { %v2502_v3 = vmul.f32 %v3381_v62, %v4131_v57  ;;  %v2521_v4 = vadd.f32 %v4136_v61, %v2501_v2 }
 0x1eb   :  { %v2522_v5 = vadd.f32 %v4136_v61, %v2502_v3  ;;  %v2534_v9 = vmax.f32 %v2521_v4, 0.0 }
 0x1ec   :  { %v2396_v6 = vpop.f32.mrb[4].mxu0 }
 0x1ed   :  { %v3384_v7 = vadd.f32 %v2396_v6, %v998_v40  ;;  %v3338_v8 = vpop.f32.mrb[5].mxu0  ;;  %v2535_v10 = vmax.f32 %v2522_v5, 0.0 }
 0x1ee   :  { %v2399_v1 = vpop.f32.mrb[6].mxu0 }
 0x1ef   :  { %v3387_v11 = vadd.f32 %v2399_v1, %v1001_v42  ;;  %v3339_v12 = vpop.f32.mrb[7].mxu0  ;;  %v2503_v13 = vmul.f32 %v3384_v7, %v4131_v57  ;;  %v2797_v14 = vpack.c.bf16 %v2535_v10, %v2534_v9 }
 0x1f1   :  { %v2504_v15 = vmul.f32 %v3387_v11, %v4131_v57  ;;  %v2523_v16 = vadd.f32 %v4136_v61, %v2503_v13  ;;  %2798 = vst [vmem:[#allocation8] sm:$0xff] %v2797_v14  }
 0x1f3   :  { %v1038_v18 = vpop.f32.mrb[36].mxu1  ;;  %v2524_v20 = vadd.f32 %v4136_v61, %v2504_v15  ;;  %v2536_v0 = vmax.f32 %v2523_v16, 0.0 }
 0x1f4   :  { %v1069_v21 = vadd.f32 %v1056_v19, %v1038_v18  ;;  %v2404_v22 = vpop.f32.mrb[8].mxu0  ;;  %v3138_v23 = vpop.f32.mrb[37].mxu1 }
 0x1f5   :  { %v3390_v24 = vadd.f32 %v2404_v22, %v1006_v44  ;;  %v3342_v25 = vpop.f32.mrb[9].mxu0  ;;  %v1041_v26 = vpop.f32.mrb[38].mxu1  ;;  %v2537_v28 = vmax.f32 %v2524_v20, 0.0 }
 0x1f6   :  { %1082 = vst [vmem:[#allocation2 + $0x60] sm:$0xf] %v1069_v21  ;;  %v2407_v29 = vpop.f32.mrb[10].mxu0  ;;  %v3139_v30 = vpop.f32.mrb[39].mxu1 }
 0x1f7   :  { %v3393_v31 = vadd.f32 %v2407_v29, %v1009_v46  ;;  %v3343_v32 = vpop.f32.mrb[11].mxu0  ;;  %v2505_v33 = vmul.f32 %v3390_v24, %v4131_v57  ;;  %v2802_v34 = vpack.c.bf16 %v2537_v28, %v2536_v0 }
 0x1f9   :  { %v2506_v35 = vmul.f32 %v3393_v31, %v4131_v57  ;;  %v2525_v36 = vadd.f32 %v4136_v61, %v2505_v33  ;;  %2824 = vst [vmem:[#allocation8 + $0x8] sm:$0xff] %v2802_v34  }
 0x1fb   :  { %v1330_v37 = vpop.f32.mrb[16].mxu1  ;;  %v2526_v38 = vadd.f32 %v4136_v61, %v2506_v35  ;;  %v2538_v44 = vmax.f32 %v2525_v36, 0.0 }
 0x1fc   :  { %v2412_v39 = vpop.f32.mrb[12].mxu0  ;;  %v3174_v40 = vpop.f32.mrb[17].mxu1 }
 0x1fd   :  { %v3396_v41 = vadd.f32 %v2412_v39, %v1014_v48  ;;  %v3346_v42 = vpop.f32.mrb[13].mxu0  ;;  %v1333_v43 = vpop.f32.mrb[18].mxu1  ;;  %v2539_v45 = vmax.f32 %v2526_v38, 0.0  ;;  %v1364_v12 = vld [vmem:[#allocation2 + $0x60] sm:$0xf] }
 0x1fe   :  { %v2415_v46 = vpop.f32.mrb[14].mxu0  ;;  %v3175_v47 = vpop.f32.mrb[19].mxu1 }
 0x1ff   :  { %v3399_v49 = vadd.f32 %v2415_v46, %v1017_v51  ;;  %v3347_v52 = vpop.f32.mrb[15].mxu0  ;;  %v2507_v53 = vmul.f32 %v3396_v41, %v4131_v57  ;;  %v2807_v54 = vpack.c.bf16 %v2539_v45, %v2538_v44 }
 0x201   :  { %v2508_v55 = vmul.f32 %v3399_v49, %v4131_v57  ;;  %v2527_v56 = vadd.f32 %v4136_v61, %v2507_v53  ;;  %2825 = vst [vmem:[#allocation8 + $0x10] sm:$0xff] %v2807_v54  }
 0x203   :  { %v1338_v58 = vpop.f32.mrb[20].mxu1  ;;  %v2528_v59 = vadd.f32 %v4136_v61, %v2508_v55  ;;  %v2540_v3 = vmax.f32 %v2527_v56, 0.0 }
 0x204   :  { %v2420_v48 = vpop.f32.mrb[16].mxu0  ;;  %v3178_v60 = vpop.f32.mrb[21].mxu1 }
 0x205   :  { %v3402_v62 = vadd.f32 %v2420_v48, %v1330_v37  ;;  %v3350_v63 = vpop.f32.mrb[17].mxu0  ;;  %v1341_v2 = vpop.f32.mrb[22].mxu1  ;;  %v2541_v4 = vmax.f32 %v2528_v59, 0.0 }
 0x206   :  { %v2423_v51 = vpop.f32.mrb[18].mxu0  ;;  %v3179_v5 = vpop.f32.mrb[23].mxu1 }
 0x207   :  { %v3405_v6 = vadd.f32 %v2423_v51, %v1333_v43  ;;  %v3351_v7 = vpop.f32.mrb[19].mxu0  ;;  %v2509_v8 = vmul.f32 %v3402_v62, %v4131_v57  ;;  %v2812_v9 = vpack.c.bf16 %v2541_v4, %v2540_v3 }
 0x209   :  { %v2510_v10 = vmul.f32 %v3405_v6, %v4131_v57  ;;  %v2529_v1 = vadd.f32 %v4136_v61, %v2509_v8  ;;  %2826 = vst [vmem:[#allocation8 + $0x18] sm:$0xff] %v2812_v9  }
 0x20b   :  { %v1346_v11 = vpop.f32.mrb[40].mxu1  ;;  %v2530_v13 = vadd.f32 %v4136_v61, %v2510_v10  ;;  %v2542_v21 = vmax.f32 %v2529_v1, 0.0 }
 0x20c   :  { %v1377_v14 = vadd.f32 %v1364_v12, %v1346_v11  ;;  %v2428_v15 = vpop.f32.mrb[20].mxu0  ;;  %v3182_v16 = vpop.f32.mrb[41].mxu1 }
 0x20d   :  { %v3408_v18 = vadd.f32 %v2428_v15, %v1338_v58  ;;  %v3354_v19 = vpop.f32.mrb[21].mxu0  ;;  %v1349_v20 = vpop.f32.mrb[42].mxu1  ;;  %v2543_v22 = vmax.f32 %v2530_v13, 0.0 }
 0x20e   :  { %1390 = vst [vmem:[#allocation2 + $0x60] sm:$0xf] %v1377_v14  ;;  %v2431_v23 = vpop.f32.mrb[22].mxu0  ;;  %v3183_v24 = vpop.f32.mrb[43].mxu1 }
 0x20f   :  { %v3411_v25 = vadd.f32 %v2431_v23, %v1341_v2  ;;  %v3355_v26 = vpop.f32.mrb[23].mxu0  ;;  %v2511_v0 = vmul.f32 %v3408_v18, %v4131_v57  ;;  %v2817_v28 = vpack.c.bf16 %v2543_v22, %v2542_v21 }
 0x211   :  { %v2512_v29 = vmul.f32 %v3411_v25, %v4131_v57  ;;  %v2531_v30 = vadd.f32 %v4136_v61, %v2511_v0  ;;  %2827 = vst [vmem:[#allocation8 + $0x20] sm:$0xff] %v2817_v28  }
 0x213   :  { %v2532_v31 = vadd.f32 %v4136_v61, %v2512_v29  ;;  %v2544_v35 = vmax.f32 %v2531_v30, 0.0 }
 0x214   :  { %v2436_v32 = vpop.f32.mrb[36].mxu0 }
 0x215   :  { %v1623_v33 = vld [vmem:[#allocation2 + $0x60] sm:$0xf]  ;;  %v3358_v34 = vpop.f32.mrb[37].mxu0  ;;  %v2545_v36 = vmax.f32 %v2532_v31, 0.0 }
 0x216   :  { %v1636_v37 = vadd.f32 %v1623_v33, %v4122_v17  ;;  %v2439_v38 = vpop.f32.mrb[38].mxu0 }
 0x217   :  { %v3359_v39 = vpop.f32.mrb[39].mxu0  ;;  %v2822_v40 = vpack.c.bf16 %v2545_v36, %v2544_v35 }
 0x218   :  { %1649 = vst [vmem:[#allocation2 + $0x60] sm:$0xf] %v1636_v37 }
 0x219   :  { %2828 = vst [vmem:[#allocation8 + $0x28] sm:$0xff] %v2822_v40  }
 0x21f   :  { %v1881_v41 = vld [vmem:[#allocation2 + $0x60] sm:$0xf] }
 0x220   :  { %v1894_v42 = vadd.f32 %v1881_v41, %v4124_v27 }
 0x222   :  { %1907 = vst [vmem:[#allocation2 + $0x60] sm:$0xf] %v1894_v42 }
 0x229   :  { %v2192_v43 = vld [vmem:[#allocation2 + $0x60] sm:$0xf] }
 0x22a   :  { %v2205_v44 = vadd.f32 %v2192_v43, %v4126_v50 }
 0x22c   :  { %2218 = vst [vmem:[#allocation2 + $0x60] sm:$0xf] %v2205_v44 }
 0x233   :  { %v2454_v45 = vld [vmem:[#allocation2 + $0x60] sm:$0xf] }
 0x234   :  { %v2467_v46 = vadd.f32 %v2454_v45, %v2436_v32 }
 0x236   :  { %2480 = vst [vmem:[#allocation2 + $0x60] sm:$0xf] %v2467_v46 }
 0x23d   :  { %v2493_v47 = vld [vmem:[#allocation2 + $0x60] sm:$0xf] }
 0x23e   :  { %v2513_v49 = vmul.f32 %v4131_v57, %v2493_v47 }
 0x240   :  { %v2533_v17 = vadd.f32 %v4136_v61, %v2513_v49 }
 0x242   :  { %v2546_v52 = vmax.f32 %v2533_v17, 0.0 }
 0x244   :  { %v2793_v53 = vpack.c.bf16 %v2546_v52, %v2546_v52 }
 0x246   :  { %2612 = vst [vmem:[#allocation8 + $0x30] sm:$0x3] %v2793_v53 }
 0x247   :  { %3785 = shalt.err (!%p3782_p6)
}
 0x248   :  { %s3786_s20 = scalar_lea.hbm %s4186_s4, 832 }
 0x249   :  { %p3787_p7 = scmp.ne.s32.totalorder %s4186_s4, %s3786_s20  ;;  %p3790_p8 = scmp.lt.u32.totalorder %s3786_s20, %s4186_s4 }
 0x24b   :  { %p3792_p9 = pnand %p3790_p8, %p3787_p7 }
 0x24d   :  { %3795 = shalt.err (!%p3792_p9)
}
 0x24e   :  { %2624 = dma.vmem_to_hbm [thread:$0]  %s2619_s3, 832, %s4186_s4, [#allocation5], %s3803_s25, %s3803_s25, %s3804_s26  }
 0x24f   :  { %3800 = dma.done.wait [#allocation5], 832  }
 0x250   :  { %3801 = vsyncadd [#allocation5], 4294966464 }
 0x251   :  { %2628 = vsyncpa [#allocation4], 1 }
 0x252   :  { %2629 = vsyncpa [#allocation7], 1 }
 0x253   :  { %2630 = vsyncpa [#allocation5], 1 }

</bundles_post_ra>
